<compile_context>
chip_gen: v5e
topology: v5e:2x2
jax: 0.10.0
libtpu: 0.0.40
codegen_flags: <defaults>
</compile_context>

<pallas_src>
import jax
import jax.numpy as jnp
from jax.experimental import pallas as pl
from jax.experimental.pallas import tpu as pltpu

DUAL_FEATURE_GAIN = 15   # gain applied to feature column 0
FEATURE_GAIN = 5         # gain applied to the remaining feature columns
NEGATIVE_SLOPE = 0.2     # GATConv LeakyReLU default


def _round_up(x, m):
    return ((x + m - 1) // m) * m


def _feature_gain(feats):
    """cat(first column tiled x15, remaining columns tiled x5) — matches torch .repeat."""
    return jnp.concatenate(
        [jnp.tile(feats[:, :1], (1, DUAL_FEATURE_GAIN)),
         jnp.tile(feats[:, 1:], (1, FEATURE_GAIN))], axis=1)


def _dense_adj(edges, n):
    """Edge list [2, E] (row0 = src, row1 = dst) -> {0,1} adjacency adj[dst, src] with
    self loops (GATConv add_self_loops=True). Duplicate edges collapse."""
    src, dst = edges[0], edges[1]
    adj = jnp.zeros((n, n), jnp.float32).at[dst, src].set(1.0)
    return jnp.maximum(adj, jnp.eye(n, dtype=jnp.float32))


def gat4_forward(node_feats, col_feats, edges, params):
    """node_feats [Nn, Fn], col_feats [Nc, Fc], edges int32 [2, E] -> logits [Nc, embed]."""
    (wn, bn, wc, bc, w1, a1s, a1d, b1, w2, a2s, a2d, b2, wo, bo) = params
    n_nodes, n_cols = node_feats.shape[0], col_feats.shape[0]
    # Sublane-aligned row splits are required for the in-kernel concat / row slices.
    assert n_nodes % 8 == 0 and n_cols % 8 == 0, "n_nodes and n_cols must be multiples of 8"
    n = n_nodes + n_cols
    hid = wn.shape[1]
    heads = a1s.shape[0]
    embed = wo.shape[1]

    # ---- wrapper-side preprocessing: pure data layout + data-dependent scatter ----
    nf = _feature_gain(node_feats)
    cf = _feature_gain(col_feats)
    # Zero-pad the ragged contraction dims to a 128-lane boundary (exact: padded weight
    # rows are zero), so the encoder matmuls are fully lane-aligned.
    kn = _round_up(nf.shape[1], 128)
    kc = _round_up(cf.shape[1], 128)
    nf_p = jnp.pad(nf, ((0, 0), (0, kn - nf.shape[1])))
    cf_p = jnp.pad(cf, ((0, 0), (0, kc - cf.shape[1])))
    wn_p = jnp.pad(wn, ((0, kn - wn.shape[0]), (0, 0)))
    wc_p = jnp.pad(wc, ((0, kc - wc.shape[0]), (0, 0)))
    # Edge list -> dense adjacency (scatter stays in XLA). conv2 uses the flipped edge
    # direction, whose adjacency is exactly adj1.T; only the column rows are needed.
    adj1 = _dense_adj(edges, n)                                  # [N, N]
    adj2c = adj1[:, n_nodes:].T                                  # [n_cols, N] == adj1.T[n_nodes:]
    # Block-diagonal att_dst weights: adst_all = xp1 @ a1d_blk gives [N, heads] on the MXU.
    eye_h = jnp.eye(heads, dtype=jnp.float32)
    a1d_blk = (a1d[:, :, None] * eye_h[:, None, :]).reshape(heads * hid, heads)
    a2d_col = a2d.reshape(hid, 1)                                # [hid, 1]

    def kernel(nf_ref, cf_ref, adj1_ref, adj2c_ref,
               wn_ref, bn_ref, wc_ref, bc_ref,
               w1_ref, a1s_ref, a1dblk_ref, b1_ref,
               w2_ref, a2s_ref, a2dcol_ref, b2_ref,
               wo_ref, bo_ref,
               out_ref):
        f32 = jnp.float32

        # ---- node / column encoders: Linear + ReLU, concatenated into one [N, hid] slab ----
        nemb = jnp.maximum(
            jnp.dot(nf_ref[...], wn_ref[...], preferred_element_type=f32) + bn_ref[...], 0.0)
        cemb = jnp.maximum(
            jnp.dot(cf_ref[...], wc_ref[...], preferred_element_type=f32) + bc_ref[...], 0.0)
        x = jnp.concatenate([nemb, cemb], axis=0)                                  # [N, hid]

        # ---- conv1: multi-head GAT as dense masked attention over the whole graph ----
        xp1 = jnp.dot(x, w1_ref[...], preferred_element_type=f32)                  # [N, H*hid]
        # alpha_dst for every head in one small MXU matmul (block-diagonal weight).
        adst_all = jnp.dot(xp1, a1dblk_ref[...], preferred_element_type=f32)       # [N, H]
        adj1v = adj1_ref[...]
        head_outs = []
        for h in range(heads):                                                     # static unroll
            xh = xp1[:, h * hid:(h + 1) * hid]                                     # [N, hid]
            # alpha_src_j directly as a [1, N] row (no N^2*hid matmul, no broadcast_to).
            asrc = jax.lax.dot_general(a1s_ref[h:h + 1, :], xh,
                                       (((1,), (1,)), ((), ())),
                                       preferred_element_type=f32)                 # [1, N]
            e = adst_all[:, h:h + 1] + asrc                                        # e[i, j]
            e = jnp.where(e > 0, e, NEGATIVE_SLOPE * e)                            # LeakyReLU
            e = jnp.where(adj1v > 0.5, e, -1e30)                                   # mask non-edges
            m = jnp.max(e, axis=-1, keepdims=True)
            p = jnp.exp(e - m)
            # Deferred normalization: value matmul first, then a [N,1] row scale.
            o = jnp.dot(p, xh, preferred_element_type=f32)                         # [N, hid]
            o = o * pl.reciprocal(jnp.sum(p, axis=-1, keepdims=True), approx=False)
            head_outs.append(o)
        h1 = jnp.maximum(jnp.concatenate(head_outs, axis=1) + b1_ref[...], 0.0)    # [N, H*hid]

        # ---- conv2: single-head GAT on the flipped edges, computed only for column rows ----
        xp2 = jnp.dot(h1, w2_ref[...], preferred_element_type=f32)                 # [N, hid]
        xp2c = xp2[n_nodes:, :]                                                    # [n_cols, hid]
        adst_c = jnp.dot(xp2c, a2dcol_ref[...], preferred_element_type=f32)        # [n_cols, 1]
        asrc2 = jax.lax.dot_general(a2s_ref[...], xp2,
                                    (((1,), (1,)), ((), ())),
                                    preferred_element_type=f32)                    # [1, N]
        e2 = adst_c + asrc2                                                        # [n_cols, N]
        e2 = jnp.where(e2 > 0, e2, NEGATIVE_SLOPE * e2)
        e2 = jnp.where(adj2c_ref[...] > 0.5, e2, -1e30)
        m2 = jnp.max(e2, axis=-1, keepdims=True)
        p2 = jnp.exp(e2 - m2)
        o2 = jnp.dot(p2, xp2, preferred_element_type=f32)                          # [n_cols, hid]
        o2 = o2 * pl.reciprocal(jnp.sum(p2, axis=-1, keepdims=True), approx=False)
        h2c = jnp.maximum(o2 + b2_ref[...], 0.0)

        # ---- output head (columns only), lane-dense store ----
        out_ref[...] = (jnp.dot(h2c, wo_ref[...], preferred_element_type=f32) + bo_ref[...])

    args = (nf_p, cf_p, adj1, adj2c, wn_p, bn, wc_p, bc,
            w1, a1s, a1d_blk, b1, w2, a2s, a2d_col, b2, wo, bo)

    def full_spec(a):
        nd = a.ndim
        return pl.BlockSpec(a.shape, lambda i, _nd=nd: (0,) * _nd)

    flops = 2 * (n_nodes * kn * hid + n_cols * kc * hid            # encoders
                 + n * hid * heads * hid                           # conv1 lin
                 + n * heads * hid * heads                         # conv1 alpha_dst
                 + heads * (hid * n + n * n * hid)                 # conv1 alpha_src + p@x
                 + n * heads * hid * hid                           # conv2 lin
                 + n_cols * hid + hid * n + n_cols * n * hid       # conv2 attention (col rows)
                 + n_cols * hid * embed)                           # output head
    cost = pl.CostEstimate(
        flops=int(flops),
        transcendentals=int(heads * n * n + n_cols * n),
        bytes_accessed=int(4 * (sum(int(a.size) for a in args) + n_cols * embed)))

    return pl.pallas_call(
        kernel,
        out_shape=jax.ShapeDtypeStruct((n_cols, embed), jnp.float32),
        grid=(1,),
        in_specs=[full_spec(a) for a in args],
        out_specs=pl.BlockSpec((n_cols, embed), lambda i: (0, 0)),
        compiler_params=pltpu.CompilerParams(
            dimension_semantics=("arbitrary",),
            vmem_limit_bytes=48 * 1024 * 1024),
        cost_estimate=cost,
    )(*args)


# ------------------------- pure-JAX reference (same math) -------------------------
def _reference_gat_layer(x, w, att_src, att_dst, bias, adj):
    hp = jax.lax.Precision.HIGHEST
    heads, d = att_src.shape
    xp = jnp.dot(x, w, precision=hp)
    outs = []
    for h in range(heads):
        xh = xp[:, h * d:(h + 1) * d]
        adst = jnp.sum(xh * att_dst[h], axis=1, keepdims=True)   # [N, 1]
        asrc = jnp.sum(xh * att_src[h], axis=1, keepdims=True)   # [N, 1]
        e = adst + asrc.T                                        # e[i, j] = adst_i + asrc_j
        e = jnp.where(e > 0, e, NEGATIVE_SLOPE * e)
        e = jnp.where(adj > 0.5, e, -1e30)
        alpha = jax.nn.softmax(e, axis=-1)
        outs.append(jnp.dot(alpha, xh, precision=hp))
    return jnp.concatenate(outs, axis=1) + bias


def gat4_reference(node_feats, col_feats, edges, params):
    (wn, bn, wc, bc, w1, a1s, a1d, b1, w2, a2s, a2d, b2, wo, bo) = params
    hp = jax.lax.Precision.HIGHEST
    nf = _feature_gain(node_feats)
    cf = _feature_gain(col_feats)
    nemb = jax.nn.relu(jnp.dot(nf, wn, precision=hp) + bn)
    cemb = jax.nn.relu(jnp.dot(cf, wc, precision=hp) + bc)
    x = jnp.concatenate([nemb, cemb], axis=0)
    n = x.shape[0]
    adj1 = _dense_adj(edges, n)
    adj2 = _dense_adj(jnp.flip(edges, axis=0), n)
    h1 = jax.nn.relu(_reference_gat_layer(x, w1, a1s, a1d, b1, adj1))
    h2 = jax.nn.relu(_reference_gat_layer(h1, w2, a2s, a2d, b2, adj2))
    n_cols = col_feats.shape[0]
    return jnp.dot(h2[-n_cols:], wo, precision=hp) + bo


def init_params(key, node_fdim, col_fdim, hidden, heads, embed_dim):
    fn_in = DUAL_FEATURE_GAIN + (node_fdim - 1) * FEATURE_GAIN
    fc_in = DUAL_FEATURE_GAIN + (col_fdim - 1) * FEATURE_GAIN
    ks = jax.random.split(key, 14)

    def unif(k, shape, fan_in):
        bound = 1.0 / (fan_in ** 0.5)
        return jax.random.uniform(k, shape, jnp.float32, -bound, bound)

    wn, bn = unif(ks[0], (fn_in, hidden), fn_in), unif(ks[1], (1, hidden), fn_in)
    wc, bc = unif(ks[2], (fc_in, hidden), fc_in), unif(ks[3], (1, hidden), fc_in)
    w1 = unif(ks[4], (hidden, heads * hidden), hidden)          # GATConv lin (no bias)
    a1s = unif(ks[5], (heads, hidden), hidden)
    a1d = unif(ks[6], (heads, hidden), hidden)
    b1 = unif(ks[7], (1, heads * hidden), hidden)
    w2 = unif(ks[8], (heads * hidden, hidden), heads * hidden)
    a2s = unif(ks[9], (1, hidden), hidden)
    a2d = unif(ks[10], (1, hidden), hidden)
    b2 = unif(ks[11], (1, hidden), heads * hidden)
    wo, bo = unif(ks[12], (hidden, embed_dim), hidden), unif(ks[13], (1, embed_dim), hidden)
    return (wn, bn, wc, bc, w1, a1s, a1d, b1, w2, a2s, a2d, b2, wo, bo)


if __name__ == "__main__":
    # Small, TPU-friendly sizes (module defaults are hidden=256, heads=8).
    NODE_FDIM, COL_FDIM = 3, 4          # raw feature dims (col0 gains x15, rest x5)
    HIDDEN, HEADS, EMBED = 128, 2, 128  # lane-dense widths
    NN, NC, E = 8, 8, 24                # constraint nodes, column nodes, edges (N = 16)

    key = jax.random.PRNGKey(0)
    k_nf, k_cf, k_src, k_dst, k_par = jax.random.split(key, 5)
    node_feats = jax.random.normal(k_nf, (NN, NODE_FDIM), jnp.float32)
    col_feats = jax.random.normal(k_cf, (NC, COL_FDIM), jnp.float32)
    src = jax.random.randint(k_src, (E,), 0, NN)            # constraint -> column edges
    dst = jax.random.randint(k_dst, (E,), NN, NN + NC)
    edges = jnp.stack([src, dst], axis=0).astype(jnp.int32)

    params = init_params(k_par, NODE_FDIM, COL_FDIM, HIDDEN, HEADS, EMBED)

    logits = jax.jit(gat4_forward)(node_feats, col_feats, edges, params)
    logits = jax.block_until_ready(logits)

    ref = gat4_reference(node_feats, col_feats, edges, params)
    assert logits.shape == (NC, EMBED)
    max_err = float(jnp.max(jnp.abs(logits - ref)))
    assert jnp.allclose(logits, ref, atol=2e-3, rtol=2e-3), f"max abs err {max_err}"

    print("KERNEL_OK")
</pallas_src>

<mosaic_0001>
module attributes {stable_mosaic.version = 11 : i64} {
  func.func @kernel(%arg0: i32, %arg1: memref<8x128xf32, #tpu.memory_space<vmem>>, %arg2: memref<8x128xf32, #tpu.memory_space<vmem>>, %arg3: memref<16x16xf32, #tpu.memory_space<vmem>>, %arg4: memref<8x16xf32, #tpu.memory_space<vmem>>, %arg5: memref<128x128xf32, #tpu.memory_space<vmem>>, %arg6: memref<1x128xf32, #tpu.memory_space<vmem>>, %arg7: memref<128x128xf32, #tpu.memory_space<vmem>>, %arg8: memref<1x128xf32, #tpu.memory_space<vmem>>, %arg9: memref<128x256xf32, #tpu.memory_space<vmem>>, %arg10: memref<2x128xf32, #tpu.memory_space<vmem>>, %arg11: memref<256x2xf32, #tpu.memory_space<vmem>>, %arg12: memref<1x256xf32, #tpu.memory_space<vmem>>, %arg13: memref<256x128xf32, #tpu.memory_space<vmem>>, %arg14: memref<1x128xf32, #tpu.memory_space<vmem>>, %arg15: memref<128x1xf32, #tpu.memory_space<vmem>>, %arg16: memref<1x128xf32, #tpu.memory_space<vmem>>, %arg17: memref<128x128xf32, #tpu.memory_space<vmem>>, %arg18: memref<1x128xf32, #tpu.memory_space<vmem>>, %arg19: memref<8x128xf32, #tpu.memory_space<vmem>>) attributes {dimension_semantics = [#tpu.dimension_semantics<arbitrary>], iteration_bounds = array<i64: 1>, scalar_prefetch = 0 : i64, scratch_operands = 0 : i64, tpu.core_type = #tpu.core_type<tc>, window_params = [{pipeline_mode = #tpu.pipeline_mode<synchronous>, transform_indices = @transform_0, window_bounds = array<i64: 8, 128>}, {pipeline_mode = #tpu.pipeline_mode<synchronous>, transform_indices = @transform_1, window_bounds = array<i64: 8, 128>}, {pipeline_mode = #tpu.pipeline_mode<synchronous>, transform_indices = @transform_2, window_bounds = array<i64: 16, 16>}, {pipeline_mode = #tpu.pipeline_mode<synchronous>, transform_indices = @transform_3, window_bounds = array<i64: 8, 16>}, {pipeline_mode = #tpu.pipeline_mode<synchronous>, transform_indices = @transform_4, window_bounds = array<i64: 128, 128>}, {pipeline_mode = #tpu.pipeline_mode<synchronous>, transform_indices = @transform_5, window_bounds = array<i64: 1, 128>}, {pipeline_mode = #tpu.pipeline_mode<synchronous>, transform_indices = @transform_6, window_bounds = array<i64: 128, 128>}, {pipeline_mode = #tpu.pipeline_mode<synchronous>, transform_indices = @transform_7, window_bounds = array<i64: 1, 128>}, {pipeline_mode = #tpu.pipeline_mode<synchronous>, transform_indices = @transform_8, window_bounds = array<i64: 128, 256>}, {pipeline_mode = #tpu.pipeline_mode<synchronous>, transform_indices = @transform_9, window_bounds = array<i64: 2, 128>}, {pipeline_mode = #tpu.pipeline_mode<synchronous>, transform_indices = @transform_10, window_bounds = array<i64: 256, 2>}, {pipeline_mode = #tpu.pipeline_mode<synchronous>, transform_indices = @transform_11, window_bounds = array<i64: 1, 256>}, {pipeline_mode = #tpu.pipeline_mode<synchronous>, transform_indices = @transform_12, window_bounds = array<i64: 256, 128>}, {pipeline_mode = #tpu.pipeline_mode<synchronous>, transform_indices = @transform_13, window_bounds = array<i64: 1, 128>}, {pipeline_mode = #tpu.pipeline_mode<synchronous>, transform_indices = @transform_14, window_bounds = array<i64: 128, 1>}, {pipeline_mode = #tpu.pipeline_mode<synchronous>, transform_indices = @transform_15, window_bounds = array<i64: 1, 128>}, {pipeline_mode = #tpu.pipeline_mode<synchronous>, transform_indices = @transform_16, window_bounds = array<i64: 128, 128>}, {pipeline_mode = #tpu.pipeline_mode<synchronous>, transform_indices = @transform_17, window_bounds = array<i64: 1, 128>}, {pipeline_mode = #tpu.pipeline_mode<synchronous>, transform_indices = @transform_18, window_bounds = array<i64: 8, 128>}]} {
    %c0 = arith.constant 0 : index
    %c0_0 = arith.constant 0 : index
    %0 = vector.load %arg1[%c0, %c0_0] : memref<8x128xf32, #tpu.memory_space<vmem>>, vector<8x128xf32>
    %c0_1 = arith.constant 0 : index
    %c0_2 = arith.constant 0 : index
    %1 = vector.load %arg5[%c0_1, %c0_2] : memref<128x128xf32, #tpu.memory_space<vmem>>, vector<128x128xf32>
    %cst = arith.constant dense<0.000000e+00> : vector<8x128xf32>
    %2 = tpu.matmul %0, %1, %cst {dimension_numbers = #tpu.dot_dimension_numbers<[1], [0], [0], [1], [0, 0, 1, 1], [], []>} : vector<8x128xf32>, vector<128x128xf32>, vector<8x128xf32> -> vector<8x128xf32>
    %c0_3 = arith.constant 0 : index
    %c0_4 = arith.constant 0 : index
    %3 = vector.load %arg6[%c0_3, %c0_4] : memref<1x128xf32, #tpu.memory_space<vmem>>, vector<1x128xf32>
    %4 = vector.broadcast %3 : vector<1x128xf32> to vector<8x128xf32>
    %5 = arith.addf %2, %4 : vector<8x128xf32>
    %cst_5 = arith.constant 0.000000e+00 : f32
    %6 = vector.broadcast %cst_5 : f32 to vector<8x128xf32>
    %7 = arith.maximumf %5, %6 : vector<8x128xf32>
    %c0_6 = arith.constant 0 : index
    %c0_7 = arith.constant 0 : index
    %8 = vector.load %arg2[%c0_6, %c0_7] : memref<8x128xf32, #tpu.memory_space<vmem>>, vector<8x128xf32>
    %c0_8 = arith.constant 0 : index
    %c0_9 = arith.constant 0 : index
    %9 = vector.load %arg7[%c0_8, %c0_9] : memref<128x128xf32, #tpu.memory_space<vmem>>, vector<128x128xf32>
    %cst_10 = arith.constant dense<0.000000e+00> : vector<8x128xf32>
    %10 = tpu.matmul %8, %9, %cst_10 {dimension_numbers = #tpu.dot_dimension_numbers<[1], [0], [0], [1], [0, 0, 1, 1], [], []>} : vector<8x128xf32>, vector<128x128xf32>, vector<8x128xf32> -> vector<8x128xf32>
    %c0_11 = arith.constant 0 : index
    %c0_12 = arith.constant 0 : index
    %11 = vector.load %arg8[%c0_11, %c0_12] : memref<1x128xf32, #tpu.memory_space<vmem>>, vector<1x128xf32>
    %12 = vector.broadcast %11 : vector<1x128xf32> to vector<8x128xf32>
    %13 = arith.addf %10, %12 : vector<8x128xf32>
    %cst_13 = arith.constant 0.000000e+00 : f32
    %14 = vector.broadcast %cst_13 : f32 to vector<8x128xf32>
    %15 = arith.maximumf %13, %14 : vector<8x128xf32>
    %16 = tpu.concatenate %7, %15 in 0 : vector<8x128xf32>, vector<8x128xf32> -> vector<16x128xf32>
    %c0_14 = arith.constant 0 : index
    %c0_15 = arith.constant 0 : index
    %17 = vector.load %arg9[%c0_14, %c0_15] : memref<128x256xf32, #tpu.memory_space<vmem>>, vector<128x256xf32>
    %cst_16 = arith.constant dense<0.000000e+00> : vector<16x256xf32>
    %18 = tpu.matmul %16, %17, %cst_16 {dimension_numbers = #tpu.dot_dimension_numbers<[1], [0], [0], [1], [0, 0, 1, 1], [], []>} : vector<16x128xf32>, vector<128x256xf32>, vector<16x256xf32> -> vector<16x256xf32>
    %c0_17 = arith.constant 0 : index
    %c0_18 = arith.constant 0 : index
    %19 = vector.load %arg11[%c0_17, %c0_18] : memref<256x2xf32, #tpu.memory_space<vmem>>, vector<256x2xf32>
    %cst_19 = arith.constant dense<0.000000e+00> : vector<16x2xf32>
    %20 = tpu.matmul %18, %19, %cst_19 {dimension_numbers = #tpu.dot_dimension_numbers<[1], [0], [0], [1], [0, 0, 1, 1], [], []>} : vector<16x256xf32>, vector<256x2xf32>, vector<16x2xf32> -> vector<16x2xf32>
    %c0_20 = arith.constant 0 : index
    %c0_21 = arith.constant 0 : index
    %21 = vector.load %arg3[%c0_20, %c0_21] : memref<16x16xf32, #tpu.memory_space<vmem>>, vector<16x16xf32>
    %22 = vector.extract_strided_slice %18 {offsets = [0, 0], sizes = [16, 128], strides = [1, 1]} : vector<16x256xf32> to vector<16x128xf32>
    %c0_22 = arith.constant 0 : index
    %c0_23 = arith.constant 0 : index
    %23 = vector.load %arg10[%c0_22, %c0_23] : memref<2x128xf32, #tpu.memory_space<vmem>>, vector<1x128xf32>
    %cst_24 = arith.constant dense<0.000000e+00> : vector<1x16xf32>
    %24 = tpu.matmul %23, %22, %cst_24 {dimension_numbers = #tpu.dot_dimension_numbers<[1], [1], [0], [0], [0, 0, 1, 0], [], []>} : vector<1x128xf32>, vector<16x128xf32>, vector<1x16xf32> -> vector<1x16xf32>
    %25 = vector.extract_strided_slice %20 {offsets = [0, 0], sizes = [16, 1], strides = [1, 1]} : vector<16x2xf32> to vector<16x1xf32>
    %26 = vector.broadcast %25 : vector<16x1xf32> to vector<16x16xf32>
    %27 = vector.broadcast %24 : vector<1x16xf32> to vector<16x16xf32>
    %28 = arith.addf %26, %27 : vector<16x16xf32>
    %cst_25 = arith.constant 0.000000e+00 : f32
    %29 = vector.broadcast %cst_25 : f32 to vector<16x16xf32>
    %30 = arith.cmpf ogt, %28, %29 : vector<16x16xf32>
    %cst_26 = arith.constant 2.000000e-01 : f32
    %31 = vector.broadcast %cst_26 : f32 to vector<16x16xf32>
    %32 = arith.mulf %31, %28 : vector<16x16xf32>
    %33 = arith.select %30, %28, %32 : vector<16x16xi1>, vector<16x16xf32>
    %cst_27 = arith.constant 5.000000e-01 : f32
    %34 = vector.broadcast %cst_27 : f32 to vector<16x16xf32>
    %35 = arith.cmpf ogt, %21, %34 : vector<16x16xf32>
    %cst_28 = arith.constant -1.000000e+30 : f32
    %36 = vector.broadcast %cst_28 : f32 to vector<16x16xf32>
    %37 = arith.select %35, %33, %36 : vector<16x16xi1>, vector<16x16xf32>
    %cst_29 = arith.constant dense<0xFF800000> : vector<16xf32>
    %38 = vector.multi_reduction <maximumf>, %37, %cst_29 [1] : vector<16x16xf32> to vector<16xf32>
    %39 = vector.shape_cast %38 : vector<16xf32> to vector<16x1xf32>
    %40 = vector.broadcast %39 : vector<16x1xf32> to vector<16x16xf32>
    %41 = arith.subf %37, %40 : vector<16x16xf32>
    %42 = math.exp %41 : vector<16x16xf32>
    %cst_30 = arith.constant dense<0.000000e+00> : vector<16x128xf32>
    %43 = tpu.matmul %42, %22, %cst_30 {dimension_numbers = #tpu.dot_dimension_numbers<[1], [0], [0], [1], [0, 0, 1, 1], [], []>} : vector<16x16xf32>, vector<16x128xf32>, vector<16x128xf32> -> vector<16x128xf32>
    %cst_31 = arith.constant dense<0.000000e+00> : vector<16xf32>
    %44 = vector.multi_reduction <add>, %42, %cst_31 [1] : vector<16x16xf32> to vector<16xf32>
    %45 = vector.shape_cast %44 : vector<16xf32> to vector<16x1xf32>
    %46 = tpu.reciprocal %45 : vector<16x1xf32> -> vector<16x1xf32>
    %47 = vector.broadcast %46 : vector<16x1xf32> to vector<16x128xf32>
    %48 = arith.mulf %43, %47 : vector<16x128xf32>
    %49 = vector.extract_strided_slice %18 {offsets = [0, 128], sizes = [16, 128], strides = [1, 1]} : vector<16x256xf32> to vector<16x128xf32>
    %c1 = arith.constant 1 : index
    %c0_32 = arith.constant 0 : index
    %50 = vector.load %arg10[%c1, %c0_32] : memref<2x128xf32, #tpu.memory_space<vmem>>, vector<1x128xf32>
    %cst_33 = arith.constant dense<0.000000e+00> : vector<1x16xf32>
    %51 = tpu.matmul %50, %49, %cst_33 {dimension_numbers = #tpu.dot_dimension_numbers<[1], [1], [0], [0], [0, 0, 1, 0], [], []>} : vector<1x128xf32>, vector<16x128xf32>, vector<1x16xf32> -> vector<1x16xf32>
    %52 = vector.extract_strided_slice %20 {offsets = [0, 1], sizes = [16, 1], strides = [1, 1]} : vector<16x2xf32> to vector<16x1xf32>
    %53 = vector.broadcast %52 : vector<16x1xf32> to vector<16x16xf32>
    %54 = vector.broadcast %51 : vector<1x16xf32> to vector<16x16xf32>
    %55 = arith.addf %53, %54 : vector<16x16xf32>
    %cst_34 = arith.constant 0.000000e+00 : f32
    %56 = vector.broadcast %cst_34 : f32 to vector<16x16xf32>
    %57 = arith.cmpf ogt, %55, %56 : vector<16x16xf32>
    %cst_35 = arith.constant 2.000000e-01 : f32
    %58 = vector.broadcast %cst_35 : f32 to vector<16x16xf32>
    %59 = arith.mulf %58, %55 : vector<16x16xf32>
    %60 = arith.select %57, %55, %59 : vector<16x16xi1>, vector<16x16xf32>
    %cst_36 = arith.constant 5.000000e-01 : f32
    %61 = vector.broadcast %cst_36 : f32 to vector<16x16xf32>
    %62 = arith.cmpf ogt, %21, %61 : vector<16x16xf32>
    %cst_37 = arith.constant -1.000000e+30 : f32
    %63 = vector.broadcast %cst_37 : f32 to vector<16x16xf32>
    %64 = arith.select %62, %60, %63 : vector<16x16xi1>, vector<16x16xf32>
    %cst_38 = arith.constant dense<0xFF800000> : vector<16xf32>
    %65 = vector.multi_reduction <maximumf>, %64, %cst_38 [1] : vector<16x16xf32> to vector<16xf32>
    %66 = vector.shape_cast %65 : vector<16xf32> to vector<16x1xf32>
    %67 = vector.broadcast %66 : vector<16x1xf32> to vector<16x16xf32>
    %68 = arith.subf %64, %67 : vector<16x16xf32>
    %69 = math.exp %68 : vector<16x16xf32>
    %cst_39 = arith.constant dense<0.000000e+00> : vector<16x128xf32>
    %70 = tpu.matmul %69, %49, %cst_39 {dimension_numbers = #tpu.dot_dimension_numbers<[1], [0], [0], [1], [0, 0, 1, 1], [], []>} : vector<16x16xf32>, vector<16x128xf32>, vector<16x128xf32> -> vector<16x128xf32>
    %cst_40 = arith.constant dense<0.000000e+00> : vector<16xf32>
    %71 = vector.multi_reduction <add>, %69, %cst_40 [1] : vector<16x16xf32> to vector<16xf32>
    %72 = vector.shape_cast %71 : vector<16xf32> to vector<16x1xf32>
    %73 = tpu.reciprocal %72 : vector<16x1xf32> -> vector<16x1xf32>
    %74 = vector.broadcast %73 : vector<16x1xf32> to vector<16x128xf32>
    %75 = arith.mulf %70, %74 : vector<16x128xf32>
    %76 = tpu.concatenate %48, %75 in 1 : vector<16x128xf32>, vector<16x128xf32> -> vector<16x256xf32>
    %c0_41 = arith.constant 0 : index
    %c0_42 = arith.constant 0 : index
    %77 = vector.load %arg12[%c0_41, %c0_42] : memref<1x256xf32, #tpu.memory_space<vmem>>, vector<1x256xf32>
    %78 = vector.broadcast %77 : vector<1x256xf32> to vector<16x256xf32>
    %79 = arith.addf %76, %78 : vector<16x256xf32>
    %cst_43 = arith.constant 0.000000e+00 : f32
    %80 = vector.broadcast %cst_43 : f32 to vector<16x256xf32>
    %81 = arith.maximumf %79, %80 : vector<16x256xf32>
    %c0_44 = arith.constant 0 : index
    %c0_45 = arith.constant 0 : index
    %82 = vector.load %arg13[%c0_44, %c0_45] : memref<256x128xf32, #tpu.memory_space<vmem>>, vector<256x128xf32>
    %cst_46 = arith.constant dense<0.000000e+00> : vector<16x128xf32>
    %83 = tpu.matmul %81, %82, %cst_46 {dimension_numbers = #tpu.dot_dimension_numbers<[1], [0], [0], [1], [0, 0, 1, 1], [], []>} : vector<16x256xf32>, vector<256x128xf32>, vector<16x128xf32> -> vector<16x128xf32>
    %84 = vector.extract_strided_slice %83 {offsets = [8, 0], sizes = [8, 128], strides = [1, 1]} : vector<16x128xf32> to vector<8x128xf32>
    %c0_47 = arith.constant 0 : index
    %c0_48 = arith.constant 0 : index
    %85 = vector.load %arg15[%c0_47, %c0_48] : memref<128x1xf32, #tpu.memory_space<vmem>>, vector<128x1xf32>
    %cst_49 = arith.constant dense<0.000000e+00> : vector<8x1xf32>
    %86 = tpu.matmul %84, %85, %cst_49 {dimension_numbers = #tpu.dot_dimension_numbers<[1], [0], [0], [1], [0, 0, 1, 1], [], []>} : vector<8x128xf32>, vector<128x1xf32>, vector<8x1xf32> -> vector<8x1xf32>
    %c0_50 = arith.constant 0 : index
    %c0_51 = arith.constant 0 : index
    %87 = vector.load %arg14[%c0_50, %c0_51] : memref<1x128xf32, #tpu.memory_space<vmem>>, vector<1x128xf32>
    %cst_52 = arith.constant dense<0.000000e+00> : vector<1x16xf32>
    %88 = tpu.matmul %87, %83, %cst_52 {dimension_numbers = #tpu.dot_dimension_numbers<[1], [1], [0], [0], [0, 0, 1, 0], [], []>} : vector<1x128xf32>, vector<16x128xf32>, vector<1x16xf32> -> vector<1x16xf32>
    %89 = vector.broadcast %86 : vector<8x1xf32> to vector<8x16xf32>
    %90 = vector.broadcast %88 : vector<1x16xf32> to vector<8x16xf32>
    %91 = arith.addf %89, %90 : vector<8x16xf32>
    %cst_53 = arith.constant 0.000000e+00 : f32
    %92 = vector.broadcast %cst_53 : f32 to vector<8x16xf32>
    %93 = arith.cmpf ogt, %91, %92 : vector<8x16xf32>
    %cst_54 = arith.constant 2.000000e-01 : f32
    %94 = vector.broadcast %cst_54 : f32 to vector<8x16xf32>
    %95 = arith.mulf %94, %91 : vector<8x16xf32>
    %96 = arith.select %93, %91, %95 : vector<8x16xi1>, vector<8x16xf32>
    %c0_55 = arith.constant 0 : index
    %c0_56 = arith.constant 0 : index
    %97 = vector.load %arg4[%c0_55, %c0_56] : memref<8x16xf32, #tpu.memory_space<vmem>>, vector<8x16xf32>
    %cst_57 = arith.constant 5.000000e-01 : f32
    %98 = vector.broadcast %cst_57 : f32 to vector<8x16xf32>
    %99 = arith.cmpf ogt, %97, %98 : vector<8x16xf32>
    %cst_58 = arith.constant -1.000000e+30 : f32
    %100 = vector.broadcast %cst_58 : f32 to vector<8x16xf32>
    %101 = arith.select %99, %96, %100 : vector<8x16xi1>, vector<8x16xf32>
    %cst_59 = arith.constant dense<0xFF800000> : vector<8xf32>
    %102 = vector.multi_reduction <maximumf>, %101, %cst_59 [1] : vector<8x16xf32> to vector<8xf32>
    %103 = vector.shape_cast %102 : vector<8xf32> to vector<8x1xf32>
    %104 = vector.broadcast %103 : vector<8x1xf32> to vector<8x16xf32>
    %105 = arith.subf %101, %104 : vector<8x16xf32>
    %106 = math.exp %105 : vector<8x16xf32>
    %cst_60 = arith.constant dense<0.000000e+00> : vector<8x128xf32>
    %107 = tpu.matmul %106, %83, %cst_60 {dimension_numbers = #tpu.dot_dimension_numbers<[1], [0], [0], [1], [0, 0, 1, 1], [], []>} : vector<8x16xf32>, vector<16x128xf32>, vector<8x128xf32> -> vector<8x128xf32>
    %cst_61 = arith.constant dense<0.000000e+00> : vector<8xf32>
    %108 = vector.multi_reduction <add>, %106, %cst_61 [1] : vector<8x16xf32> to vector<8xf32>
    %109 = vector.shape_cast %108 : vector<8xf32> to vector<8x1xf32>
    %110 = tpu.reciprocal %109 : vector<8x1xf32> -> vector<8x1xf32>
    %111 = vector.broadcast %110 : vector<8x1xf32> to vector<8x128xf32>
    %112 = arith.mulf %107, %111 : vector<8x128xf32>
    %c0_62 = arith.constant 0 : index
    %c0_63 = arith.constant 0 : index
    %113 = vector.load %arg16[%c0_62, %c0_63] : memref<1x128xf32, #tpu.memory_space<vmem>>, vector<1x128xf32>
    %114 = vector.broadcast %113 : vector<1x128xf32> to vector<8x128xf32>
    %115 = arith.addf %112, %114 : vector<8x128xf32>
    %cst_64 = arith.constant 0.000000e+00 : f32
    %116 = vector.broadcast %cst_64 : f32 to vector<8x128xf32>
    %117 = arith.maximumf %115, %116 : vector<8x128xf32>
    %c0_65 = arith.constant 0 : index
    %c0_66 = arith.constant 0 : index
    %118 = vector.load %arg17[%c0_65, %c0_66] : memref<128x128xf32, #tpu.memory_space<vmem>>, vector<128x128xf32>
    %cst_67 = arith.constant dense<0.000000e+00> : vector<8x128xf32>
    %119 = tpu.matmul %117, %118, %cst_67 {dimension_numbers = #tpu.dot_dimension_numbers<[1], [0], [0], [1], [0, 0, 1, 1], [], []>} : vector<8x128xf32>, vector<128x128xf32>, vector<8x128xf32> -> vector<8x128xf32>
    %c0_68 = arith.constant 0 : index
    %c0_69 = arith.constant 0 : index
    %120 = vector.load %arg18[%c0_68, %c0_69] : memref<1x128xf32, #tpu.memory_space<vmem>>, vector<1x128xf32>
    %121 = vector.broadcast %120 : vector<1x128xf32> to vector<8x128xf32>
    %122 = arith.addf %119, %121 : vector<8x128xf32>
    %c0_70 = arith.constant 0 : index
    %c0_71 = arith.constant 0 : index
    %123 = vector.load %arg19[%c0_70, %c0_71] : memref<8x128xf32, #tpu.memory_space<vmem>>, vector<8x128xf32>
    tpu.vector_store %arg19[%c0_70, %c0_71], %122 {strides = array<i32>} : memref<8x128xf32, #tpu.memory_space<vmem>>, vector<8x128xf32>,
    return
  }
  func.func @transform_0(%arg0: i32) -> (i32, i32) {
    %c0_i32 = arith.constant 0 : i32
    %c0_i32_0 = arith.constant 0 : i32
    %c0_i32_1 = arith.constant 0 : i32
    return %c0_i32, %c0_i32_0 : i32, i32
  }
  func.func @transform_1(%arg0: i32) -> (i32, i32) {
    %c0_i32 = arith.constant 0 : i32
    %c0_i32_0 = arith.constant 0 : i32
    %c0_i32_1 = arith.constant 0 : i32
    return %c0_i32, %c0_i32_0 : i32, i32
  }
  func.func @transform_2(%arg0: i32) -> (i32, i32) {
    %c0_i32 = arith.constant 0 : i32
    %c0_i32_0 = arith.constant 0 : i32
    %c0_i32_1 = arith.constant 0 : i32
    return %c0_i32, %c0_i32_0 : i32, i32
  }
  func.func @transform_3(%arg0: i32) -> (i32, i32) {
    %c0_i32 = arith.constant 0 : i32
    %c0_i32_0 = arith.constant 0 : i32
    %c0_i32_1 = arith.constant 0 : i32
    return %c0_i32, %c0_i32_0 : i32, i32
  }
  func.func @transform_4(%arg0: i32) -> (i32, i32) {
    %c0_i32 = arith.constant 0 : i32
    %c0_i32_0 = arith.constant 0 : i32
    %c0_i32_1 = arith.constant 0 : i32
    return %c0_i32, %c0_i32_0 : i32, i32
  }
  func.func @transform_5(%arg0: i32) -> (i32, i32) {
    %c0_i32 = arith.constant 0 : i32
    %c0_i32_0 = arith.constant 0 : i32
    %c0_i32_1 = arith.constant 0 : i32
    return %c0_i32, %c0_i32_0 : i32, i32
  }
  func.func @transform_6(%arg0: i32) -> (i32, i32) {
    %c0_i32 = arith.constant 0 : i32
    %c0_i32_0 = arith.constant 0 : i32
    %c0_i32_1 = arith.constant 0 : i32
    return %c0_i32, %c0_i32_0 : i32, i32
  }
  func.func @transform_7(%arg0: i32) -> (i32, i32) {
    %c0_i32 = arith.constant 0 : i32
    %c0_i32_0 = arith.constant 0 : i32
    %c0_i32_1 = arith.constant 0 : i32
    return %c0_i32, %c0_i32_0 : i32, i32
  }
  func.func @transform_8(%arg0: i32) -> (i32, i32) {
    %c0_i32 = arith.constant 0 : i32
    %c0_i32_0 = arith.constant 0 : i32
    %c0_i32_1 = arith.constant 0 : i32
    return %c0_i32, %c0_i32_0 : i32, i32
  }
  func.func @transform_9(%arg0: i32) -> (i32, i32) {
    %c0_i32 = arith.constant 0 : i32
    %c0_i32_0 = arith.constant 0 : i32
    %c0_i32_1 = arith.constant 0 : i32
    return %c0_i32, %c0_i32_0 : i32, i32
  }
  func.func @transform_10(%arg0: i32) -> (i32, i32) {
    %c0_i32 = arith.constant 0 : i32
    %c0_i32_0 = arith.constant 0 : i32
    %c0_i32_1 = arith.constant 0 : i32
    return %c0_i32, %c0_i32_0 : i32, i32
  }
  func.func @transform_11(%arg0: i32) -> (i32, i32) {
    %c0_i32 = arith.constant 0 : i32
    %c0_i32_0 = arith.constant 0 : i32
    %c0_i32_1 = arith.constant 0 : i32
    return %c0_i32, %c0_i32_0 : i32, i32
  }
  func.func @transform_12(%arg0: i32) -> (i32, i32) {
    %c0_i32 = arith.constant 0 : i32
    %c0_i32_0 = arith.constant 0 : i32
    %c0_i32_1 = arith.constant 0 : i32
    return %c0_i32, %c0_i32_0 : i32, i32
  }
  func.func @transform_13(%arg0: i32) -> (i32, i32) {
    %c0_i32 = arith.constant 0 : i32
    %c0_i32_0 = arith.constant 0 : i32
    %c0_i32_1 = arith.constant 0 : i32
    return %c0_i32, %c0_i32_0 : i32, i32
  }
  func.func @transform_14(%arg0: i32) -> (i32, i32) {
    %c0_i32 = arith.constant 0 : i32
    %c0_i32_0 = arith.constant 0 : i32
    %c0_i32_1 = arith.constant 0 : i32
    return %c0_i32, %c0_i32_0 : i32, i32
  }
  func.func @transform_15(%arg0: i32) -> (i32, i32) {
    %c0_i32 = arith.constant 0 : i32
    %c0_i32_0 = arith.constant 0 : i32
    %c0_i32_1 = arith.constant 0 : i32
    return %c0_i32, %c0_i32_0 : i32, i32
  }
  func.func @transform_16(%arg0: i32) -> (i32, i32) {
    %c0_i32 = arith.constant 0 : i32
    %c0_i32_0 = arith.constant 0 : i32
    %c0_i32_1 = arith.constant 0 : i32
    return %c0_i32, %c0_i32_0 : i32, i32
  }
  func.func @transform_17(%arg0: i32) -> (i32, i32) {
    %c0_i32 = arith.constant 0 : i32
    %c0_i32_0 = arith.constant 0 : i32
    %c0_i32_1 = arith.constant 0 : i32
    return %c0_i32, %c0_i32_0 : i32, i32
  }
  func.func @transform_18(%arg0: i32) -> (i32, i32) {
    %c0_i32 = arith.constant 0 : i32
    %c0_i32_0 = arith.constant 0 : i32
    %c0_i32_1 = arith.constant 0 : i32
    return %c0_i32, %c0_i32_0 : i32, i32
  }
}

</mosaic_0001>

<bundles_post_ra>
// kernel: tile.39
= control target key start
LH: loop header
LB: loop body
LE: loop exit
PB: predicated region body
PF: predicated region fallthrough
CT: control target
= control target key end

     0   :  { %vm23_vm0 = vcmask 64512   ;;  %s93_s0 = inlined_call_operand.vmem [shape: f32[8,5,3], index: 0, kind: input, shape index: {}]   ;;  %s94_s1 = inlined_call_operand.vmem [shape: f32[8,15], index: 1, kind: output, shape index: {}]  }
   0x1   :  { %v45_v0 = vld [vmem:[%s93_s0 + $0x10] sm:$0xf]  ;;  %v46_v1 = vld [vmem:[%s93_s0 + $0xc] sm:$0xf]  ;;  %v47_v2 = vld [vmem:[%s93_s0 + $0x8] sm:$0xf] }
   0x2   :  { %7 = vst [vmem:[#allocation0 + $0x18] sm:$0xf] %v45_v0  ;;  %v48_v3 = vld [vmem:[%s93_s0 + $0x4] sm:$0xf]  ;;  %v20_v4 = vld [vmem:[%s93_s0] sm:$0xf] }
   0x3   :  { %11 = vst [vmem:[#allocation0 + $0x20] sm:$0xf] %v46_v1 }
   0x4   :  { %15 = vst [vmem:[#allocation0] sm:$0xf] %v47_v2 }
   0x5   :  { %19 = vst [vmem:[#allocation0 + $0x10] sm:$0xf] %v48_v3 }
   0x6   :  { %21 = vst [vmem:[#allocation0 + $0x8] sm:$0xf] %v20_v4 }
   0x9   :  { %v41_v5 = vld [vmem:[#allocation0 + $0x18] sm:$0x7]  }
   0xa   :  { %v36_v6 = vld [vmem:[#allocation0 + $0x20] sm:$0x7]   ;;  %52 = vst.msk [vmem:[%s94_s1 + $0xc] sm:$0x7] %vm23_vm0, %v41_v5  }
   0xb   :  { %v31_v7 = vld [vmem:[#allocation0] sm:$0x7]   ;;  %51 = vst.msk [vmem:[%s94_s1 + $0x9] sm:$0x7] %vm23_vm0, %v36_v6  }
   0xc   :  { %v26_v8 = vld [vmem:[#allocation0 + $0x10] sm:$0x7]   ;;  %50 = vst.msk [vmem:[%s94_s1 + $0x6] sm:$0x7] %vm23_vm0, %v31_v7  }
   0xd   :  { %v22_v9 = vld [vmem:[#allocation0 + $0x8] sm:$0x7]   ;;  %49 = vst.msk [vmem:[%s94_s1 + $0x3] sm:$0x7] %vm23_vm0, %v26_v8  }
   0xe   :  { %24 = vst.msk [vmem:[%s94_s1] sm:$0x7] %vm23_vm0, %v22_v9  }

// kernel: tile.29
= control target key start
LH: loop header
LB: loop body
LE: loop exit
PB: predicated region body
PF: predicated region fallthrough
CT: control target
= control target key end

     0   :  { %vm23_vm0 = vcmask 64512   ;;  %s93_s0 = inlined_call_operand.vmem [shape: f32[8,5,2], index: 0, kind: input, shape index: {}]   ;;  %s94_s1 = inlined_call_operand.vmem [shape: f32[8,10], index: 1, kind: output, shape index: {}]  }
   0x1   :  { %v45_v0 = vld [vmem:[%s93_s0 + $0x8] sm:$0x3]  ;;  %v46_v1 = vld [vmem:[%s93_s0 + $0x6] sm:$0x3]  ;;  %v47_v2 = vld [vmem:[%s93_s0 + $0x4] sm:$0x3] }
   0x2   :  { %7 = vst [vmem:[#allocation0 + $0x18] sm:$0x3] %v45_v0  ;;  %v48_v3 = vld [vmem:[%s93_s0 + $0x2] sm:$0x3]  ;;  %v20_v4 = vld [vmem:[%s93_s0] sm:$0x3] }
   0x3   :  { %11 = vst [vmem:[#allocation0 + $0x20] sm:$0x3] %v46_v1 }
   0x4   :  { %15 = vst [vmem:[#allocation0] sm:$0x3] %v47_v2 }
   0x5   :  { %19 = vst [vmem:[#allocation0 + $0x10] sm:$0x3] %v48_v3 }
   0x6   :  { %21 = vst [vmem:[#allocation0 + $0x8] sm:$0x3] %v20_v4 }
   0x9   :  { %v41_v5 = vld [vmem:[#allocation0 + $0x18] sm:$0x3]  }
   0xa   :  { %v36_v6 = vld [vmem:[#allocation0 + $0x20] sm:$0x3]   ;;  %52 = vst.msk [vmem:[%s94_s1 + $0x8] sm:$0x3] %vm23_vm0, %v41_v5  }
   0xb   :  { %v31_v7 = vld [vmem:[#allocation0] sm:$0x3]   ;;  %51 = vst.msk [vmem:[%s94_s1 + $0x6] sm:$0x3] %vm23_vm0, %v36_v6  }
   0xc   :  { %v26_v8 = vld [vmem:[#allocation0 + $0x10] sm:$0x3]   ;;  %50 = vst.msk [vmem:[%s94_s1 + $0x4] sm:$0x3] %vm23_vm0, %v31_v7  }
   0xd   :  { %v22_v9 = vld [vmem:[#allocation0 + $0x8] sm:$0x3]   ;;  %49 = vst.msk [vmem:[%s94_s1 + $0x2] sm:$0x3] %vm23_vm0, %v26_v8  }
   0xe   :  { %24 = vst.msk [vmem:[%s94_s1] sm:$0x3] %vm23_vm0, %v22_v9  }

// kernel: gat4_forward.1
= control target key start
LH: loop header
LB: loop body
LE: loop exit
PB: predicated region body
PF: predicated region fallthrough
CT: control target
= control target key end

     0   :  { %s1545_s0 = inlined_call_operand.vmem [shape: f32[8,128], index: 0, kind: input, shape index: {}]   ;;  %s1546_s1 = inlined_call_operand.vmem [shape: f32[8,128], index: 1, kind: input, shape index: {}]   ;;  %s1547_s2 = inlined_call_operand.vmem [shape: f32[16,16], index: 2, kind: input, shape index: {}]   ;;  %s1548_s3 = inlined_call_operand.vmem [shape: f32[8,16], index: 3, kind: input, shape index: {}]   ;;  %s1549_s4 = inlined_call_operand.vmem [shape: f32[128,128], index: 4, kind: input, shape index: {}]   ;;  %s1550_s5 = inlined_call_operand.vmem [shape: f32[1,128], index: 5, kind: input, shape index: {}]   ;;  %s1551_s6 = inlined_call_operand.vmem [shape: f32[128,128], index: 6, kind: input, shape index: {}]   ;;  %s1552_s7 = inlined_call_operand.vmem [shape: f32[1,128], index: 7, kind: input, shape index: {}]   ;;  %s1553_s8 = inlined_call_operand.vmem [shape: f32[128,256], index: 8, kind: input, shape index: {}]   ;;  %s1554_s9 = inlined_call_operand.vmem [shape: f32[2,128], index: 9, kind: input, shape index: {}]   ;;  %s1555_s10 = inlined_call_operand.vmem [shape: f32[256,2], index: 10, kind: input, shape index: {}]   ;;  %s1556_s11 = inlined_call_operand.vmem [shape: f32[1,256], index: 11, kind: input, shape index: {}]   ;;  %s1557_s12 = inlined_call_operand.vmem [shape: f32[256,128], index: 12, kind: input, shape index: {}]   ;;  %s1558_s13 = inlined_call_operand.vmem [shape: f32[1,128], index: 13, kind: input, shape index: {}]   ;;  %s1559_s14 = inlined_call_operand.vmem [shape: f32[128,1], index: 14, kind: input, shape index: {}]   ;;  %s1560_s15 = inlined_call_operand.vmem [shape: f32[1,128], index: 15, kind: input, shape index: {}]   ;;  %s1561_s16 = inlined_call_operand.vmem [shape: f32[128,128], index: 16, kind: input, shape index: {}]   ;;  %s1562_s17 = inlined_call_operand.vmem [shape: f32[1,128], index: 17, kind: input, shape index: {}]   ;;  %s1563_s18 = inlined_call_operand.hbm [shape: f32[8,128], index: 18, kind: output, shape index: {}]  }
   0x1   :  { %1565 = sst [smem:[#allocation5_spill]] %s1545_s0 }
   0x2   :  { %1566 = sst [smem:[#allocation6_spill]] %s1546_s1 }
   0x3   :  { %1567 = sst [smem:[#allocation7_spill]] %s1547_s2 }
   0x4   :  { %v76_v0 = vld [vmem:[%s1549_s4 + $0x78] sm:$0xff]  ;;  %v75_v1 = vld [vmem:[%s1549_s4 + $0x70] sm:$0xff]  ;;  %v74_v3 = vld [vmem:[%s1549_s4 + $0x68] sm:$0xff] }
   0x5   :  { %81 = vmatpush.msra.mxu0 %v76_v0  ;;  %v118_v2 = vld [vmem:[%s1551_s6 + $0x78] sm:$0xff]  ;;  %v117_v4 = vld [vmem:[%s1551_s6 + $0x70] sm:$0xff]  ;;  %v116_v5 = vld [vmem:[%s1551_s6 + $0x68] sm:$0xff] }
   0x6   :  { %123 = vmatpush.msra.mxu1 %v118_v2  ;;  %v73_v6 = vld [vmem:[%s1549_s4 + $0x60] sm:$0xff]  ;;  %v72_v8 = vld [vmem:[%s1549_s4 + $0x58] sm:$0xff]  ;;  %v71_v10 = vld [vmem:[%s1549_s4 + $0x50] sm:$0xff] }
   0x7   :  { %82 = vmatpush.msra.mxu0 %v75_v1  ;;  %v115_v7 = vld [vmem:[%s1551_s6 + $0x60] sm:$0xff]  ;;  %v114_v9 = vld [vmem:[%s1551_s6 + $0x58] sm:$0xff]  ;;  %v113_v11 = vld [vmem:[%s1551_s6 + $0x50] sm:$0xff] }
   0x8   :  { %124 = vmatpush.msra.mxu1 %v117_v4  ;;  %v70_v12 = vld [vmem:[%s1549_s4 + $0x48] sm:$0xff]  ;;  %v174_v14 = vld [vmem:[%s1553_s8 + $0xf0] sm:$0xff]  ;;  %v175_v15 = vld [vmem:[%s1553_s8 + $0xf8] sm:$0xff] }
   0x9   :  { %83 = vmatpush.msra.mxu0 %v74_v3  ;;  %v112_v13 = vld [vmem:[%s1551_s6 + $0x48] sm:$0xff]  ;;  %v69_v16 = vld [vmem:[%s1549_s4 + $0x40] sm:$0xff]  ;;  %176 = vmatpush.msra.mxu2 %v174_v14  ;;  %v170_v20 = vld [vmem:[%s1553_s8 + $0xd0] sm:$0xff] }
   0xa   :  { %125 = vmatpush.msra.mxu1 %v116_v5  ;;  %v172_v17 = vld [vmem:[%s1553_s8 + $0xe0] sm:$0xff]  ;;  %v173_v18 = vld [vmem:[%s1553_s8 + $0xe8] sm:$0xff]  ;;  %199 = vmatpush.msra.mxu3 %v175_v15  ;;  %v68_v21 = vld [vmem:[%s1549_s4 + $0x38] sm:$0xff] }
   0xb   :  { %84 = vmatpush.msra.mxu0 %v73_v6  ;;  %v111_v19 = vld [vmem:[%s1551_s6 + $0x40] sm:$0xff]  ;;  %177 = vmatpush.msra.mxu2 %v172_v17  ;;  %v171_v22 = vld [vmem:[%s1553_s8 + $0xd8] sm:$0xff]  ;;  %v67_v25 = vld [vmem:[%s1549_s4 + $0x30] sm:$0xff] }
   0xc   :  { %126 = vmatpush.msra.mxu1 %v115_v7  ;;  %v110_v23 = vld [vmem:[%s1551_s6 + $0x38] sm:$0xff]  ;;  %200 = vmatpush.msra.mxu3 %v173_v18  ;;  %v168_v24 = vld [vmem:[%s1553_s8 + $0xc0] sm:$0xff]  ;;  %v169_v26 = vld [vmem:[%s1553_s8 + $0xc8] sm:$0xff] }
   0xd   :  { %85 = vmatpush.msra.mxu0 %v72_v8  ;;  %178 = vmatpush.msra.mxu2 %v170_v20  ;;  %v66_v27 = vld [vmem:[%s1549_s4 + $0x28] sm:$0xff]  ;;  %v109_v28 = vld [vmem:[%s1551_s6 + $0x30] sm:$0xff]  ;;  %v65_v30 = vld [vmem:[%s1549_s4 + $0x20] sm:$0xff] }
   0xe   :  { %127 = vmatpush.msra.mxu1 %v114_v9  ;;  %201 = vmatpush.msra.mxu3 %v171_v22  ;;  %v166_v29 = vld [vmem:[%s1553_s8 + $0xb0] sm:$0xff]  ;;  %v108_v31 = vld [vmem:[%s1551_s6 + $0x28] sm:$0xff]  ;;  %v167_v32 = vld [vmem:[%s1553_s8 + $0xb8] sm:$0xff] }
   0xf   :  { %86 = vmatpush.msra.mxu0 %v71_v10  ;;  %179 = vmatpush.msra.mxu2 %v168_v24  ;;  %v107_v33 = vld [vmem:[%s1551_s6 + $0x20] sm:$0xff]  ;;  %v165_v35 = vld [vmem:[%s1553_s8 + $0xa8] sm:$0xff]  ;;  %v162_v36 = vld [vmem:[%s1553_s8 + $0x90] sm:$0xff] }
  0x10   :  { %128 = vmatpush.msra.mxu1 %v113_v11  ;;  %202 = vmatpush.msra.mxu3 %v169_v26  ;;  %v164_v34 = vld [vmem:[%s1553_s8 + $0xa0] sm:$0xff] }
  0x11   :  { %87 = vmatpush.msra.mxu0 %v70_v12  ;;  %180 = vmatpush.msra.mxu2 %v166_v29 }
  0x12   :  { %129 = vmatpush.msra.mxu1 %v112_v13  ;;  %203 = vmatpush.msra.mxu3 %v167_v32 }
  0x13   :  { %88 = vmatpush.msra.mxu0 %v69_v16 }
  0x14   :  { %130 = vmatpush.msra.mxu1 %v111_v19 }
  0x15   :  { %89 = vmatpush.msra.mxu0 %v68_v21 }
  0x16   :  { %131 = vmatpush.msra.mxu1 %v110_v23 }
  0x17   :  { %90 = vmatpush.msra.mxu0 %v67_v25 }
  0x18   :  { %132 = vmatpush.msra.mxu1 %v109_v28 }
  0x19   :  { %91 = vmatpush.msra.mxu0 %v66_v27 }
  0x1a   :  { %23 = vsyncpa [#allocation3], 0  ;;  %v64_v37 = vld [vmem:[%s1549_s4 + $0x18] sm:$0xff]  ;;  %133 = vmatpush.msra.mxu1 %v108_v31  ;;  %181 = vmatpush.msra.mxu2 %v164_v34  ;;  %v160_v40 = vld [vmem:[%s1553_s8 + $0x80] sm:$0xff]  ;;  %s1568_s26 = sld [smem:[#allocation5_spill]]  ;;  %vm346_vm2 = vcmask 130048  }
  0x1b   :  { %v163_v38 = vld [vmem:[%s1553_s8 + $0x98] sm:$0xff]  ;;  %92 = vmatpush.msra.mxu0 %v65_v30  ;;  %204 = vmatpush.msra.mxu3 %v165_v35  ;;  %v63_v41 = vld [vmem:[%s1549_s4 + $0x10] sm:$0xff]  ;;  %v161_v42 = vld [vmem:[%s1553_s8 + $0x88] sm:$0xff]  ;;  %s1570_s20 = sld [smem:[#allocation7_spill]]  ;;  %s876_s19 = smov [#allocation2]  }
  0x1c   :  { %v106_v39 = vld [vmem:[%s1551_s6 + $0x18] sm:$0xff]  ;;  %134 = vmatpush.msra.mxu1 %v107_v33  ;;  %182 = vmatpush.msra.mxu2 %v162_v36  ;;  %v105_v43 = vld [vmem:[%s1551_s6 + $0x10] sm:$0xff]  ;;  %v62_v45 = vld [vmem:[%s1549_s4 + $0x8] sm:$0xff] }
  0x1d   :  { %93 = vmatpush.msra.mxu0 %v64_v37  ;;  %205 = vmatpush.msra.mxu3 %v163_v38  ;;  %v158_v44 = vld [vmem:[%s1553_s8 + $0x70] sm:$0xff]  ;;  %v159_v46 = vld [vmem:[%s1553_s8 + $0x78] sm:$0xff]  ;;  %v104_v47 = vld [vmem:[%s1551_s6 + $0x8] sm:$0xff] }
  0x1e   :  { %135 = vmatpush.msra.mxu1 %v106_v39  ;;  %183 = vmatpush.msra.mxu2 %v160_v40  ;;  %v156_v48 = vld [vmem:[%s1553_s8 + $0x60] sm:$0xff]  ;;  %v157_v50 = vld [vmem:[%s1553_s8 + $0x68] sm:$0xff]  ;;  %v154_v54 = vld [vmem:[%s1553_s8 + $0x50] sm:$0xff] }
  0x1f   :  { %94 = vmatpush.msra.mxu0 %v63_v41  ;;  %206 = vmatpush.msra.mxu3 %v161_v42  ;;  %v61_v49 = vld [vmem:[%s1549_s4] sm:$0xff]  ;;  %s1569_s4 = sld [smem:[#allocation6_spill]]  ;;  %v155_v55 = vld [vmem:[%s1553_s8 + $0x58] sm:$0xff]  ;;  %v153_v57 = vld [vmem:[%s1553_s8 + $0x48] sm:$0xff] }
  0x20   :  { %136 = vmatpush.msra.mxu1 %v105_v43  ;;  %184 = vmatpush.msra.mxu2 %v158_v44  ;;  %v60_v51 = vld [vmem:[%s1568_s26] sm:$0xff]  ;;  %v150_v58 = vld [vmem:[%s1553_s8 + $0x30] sm:$0xff]  ;;  %v151_v59 = vld [vmem:[%s1553_s8 + $0x38] sm:$0xff] }
  0x21   :  { %95 = vmatpush.msra.mxu0 %v62_v45  ;;  %v103_v52 = vld [vmem:[%s1551_s6] sm:$0xff]  ;;  %207 = vmatpush.msra.mxu3 %v159_v46  ;;  %v149_v61 = vld [vmem:[%s1553_s8 + $0x28] sm:$0xff]  ;;  %v146_v62 = vld [vmem:[%s1553_s8 + $0x10] sm:$0xff] }
  0x22   :  { %137 = vmatpush.msra.mxu1 %v104_v47  ;;  %185 = vmatpush.msra.mxu2 %v156_v48  ;;  %v152_v56 = vld [vmem:[%s1553_s8 + $0x40] sm:$0xff]  ;;  %v147_v63 = vld [vmem:[%s1553_s8 + $0x18] sm:$0xff]  ;;  %v145_v1 = vld [vmem:[%s1553_s8 + $0x8] sm:$0xff]  ;;  %v874_v47 = vmov 1   ;;  %v875_v48 = vmov 0  }
  0x23   :  { %96 = vmatpush.msra.mxu0 %v61_v49  ;;  %208 = vmatpush.msra.mxu3 %v157_v50  ;;  %v148_v60 = vld [vmem:[%s1553_s8 + $0x20] sm:$0xff]  ;;  %v237_v2 = vld [vmem:[%s1555_s10 + $0x78] sm:$0xff]  ;;  %v236_v4 = vld [vmem:[%s1555_s10 + $0x70] sm:$0xff] }
  0x24   :  { %97 = vmatmul.f32.vlgmr.msra.gmra.mxu0 %v60_v51  ;;  %138 = vmatpush.msra.mxu1 %v103_v52  ;;  %v144_v0 = vld [vmem:[%s1553_s8] sm:$0xff]  ;;  %v253_v3 = vld [vmem:[%s1555_s10 + $0xf8] sm:$0xff]  ;;  %v252_v5 = vld [vmem:[%s1555_s10 + $0xf0] sm:$0xff] }
  0x25   :  { %v102_v53 = vld [vmem:[%s1569_s4] sm:$0xff]  ;;  %186 = vmatpush.msra.mxu2 %v154_v54  ;;  %209 = vmatpush.msra.mxu3 %v155_v55  ;;  %v235_v6 = vld [vmem:[%s1555_s10 + $0x68] sm:$0xff]  ;;  %v233_v10 = vld [vmem:[%s1555_s10 + $0x58] sm:$0xff] }
  0x26   :  { %139 = vmatmul.f32.vlgmr.msra.gmra.mxu1 %v102_v53  ;;  %254 = vmatpush.msrb.mxu0 %v237_v2  ;;  %v251_v7 = vld [vmem:[%s1555_s10 + $0xe8] sm:$0xff]  ;;  %v234_v8 = vld [vmem:[%s1555_s10 + $0x60] sm:$0xff]  ;;  %v249_v11 = vld [vmem:[%s1555_s10 + $0xd8] sm:$0xff] }
  0x27   :  { %187 = vmatpush.msra.mxu2 %v152_v56  ;;  %210 = vmatpush.msra.mxu3 %v153_v57  ;;  %v250_v9 = vld [vmem:[%s1555_s10 + $0xe0] sm:$0xff]  ;;  %v232_v12 = vld [vmem:[%s1555_s10 + $0x50] sm:$0xff]  ;;  %v231_v14 = vld [vmem:[%s1555_s10 + $0x48] sm:$0xff] }
  0x28   :  { %277 = vmatpush.msrb.mxu1 %v253_v3  ;;  %255 = vmatpush.msrb.mxu0 %v236_v4  ;;  %v248_v13 = vld [vmem:[%s1555_s10 + $0xd0] sm:$0xff]  ;;  %v247_v15 = vld [vmem:[%s1555_s10 + $0xc8] sm:$0xff]  ;;  %v230_v16 = vld [vmem:[%s1555_s10 + $0x40] sm:$0xff] }
  0x29   :  { %188 = vmatpush.msra.mxu2 %v150_v58  ;;  %211 = vmatpush.msra.mxu3 %v151_v59  ;;  %v246_v17 = vld [vmem:[%s1555_s10 + $0xc0] sm:$0xff]  ;;  %v229_v18 = vld [vmem:[%s1555_s10 + $0x38] sm:$0xff]  ;;  %v228_v21 = vld [vmem:[%s1555_s10 + $0x30] sm:$0xff] }
  0x2a   :  { %278 = vmatpush.msrb.mxu1 %v252_v5  ;;  %256 = vmatpush.msrb.mxu0 %v235_v6  ;;  %v245_v19 = vld [vmem:[%s1555_s10 + $0xb8] sm:$0xff]  ;;  %v824_v20 = vld [vmem:[%s1550_s5] ss:$0 sm:$0xff]  ;;  %v244_v22 = vld [vmem:[%s1555_s10 + $0xb0] sm:$0xff] }
  0x2b   :  { %189 = vmatpush.msra.mxu2 %v148_v60  ;;  %212 = vmatpush.msra.mxu3 %v149_v61  ;;  %v227_v23 = vld [vmem:[%s1555_s10 + $0x28] sm:$0xff]  ;;  %v825_v27 = vld [vmem:[%s1552_s7] ss:$0 sm:$0xff]  ;;  %v225_v32 = vld [vmem:[%s1555_s10 + $0x18] sm:$0xff] }
  0x2c   :  { %279 = vmatpush.msrb.mxu1 %v251_v7  ;;  %257 = vmatpush.msrb.mxu0 %v234_v8  ;;  %v243_v24 = vld [vmem:[%s1555_s10 + $0xa8] sm:$0xff]  ;;  %v226_v28 = vld [vmem:[%s1555_s10 + $0x20] sm:$0xff]  ;;  %v241_v33 = vld [vmem:[%s1555_s10 + $0x98] sm:$0xff] }
  0x2d   :  { %190 = vmatpush.msra.mxu2 %v146_v62  ;;  %213 = vmatpush.msra.mxu3 %v147_v63  ;;  %v242_v29 = vld [vmem:[%s1555_s10 + $0xa0] sm:$0xff]  ;;  %v224_v35 = vld [vmem:[%s1555_s10 + $0x10] sm:$0xff]  ;;  %v223_v37 = vld [vmem:[%s1555_s10 + $0x8] sm:$0xff] }
  0x2e   :  { %280 = vmatpush.msrb.mxu1 %v250_v9  ;;  %258 = vmatpush.msrb.mxu0 %v233_v10  ;;  %v240_v36 = vld [vmem:[%s1555_s10 + $0x90] sm:$0xff]  ;;  %v239_v38 = vld [vmem:[%s1555_s10 + $0x88] sm:$0xff]  ;;  %v222_v40 = vld [vmem:[%s1555_s10] sm:$0xff] }
  0x2f   :  { %191 = vmatpush.msra.mxu2 %v144_v0  ;;  %214 = vmatpush.msra.mxu3 %v145_v1  ;;  %v238_v41 = vld [vmem:[%s1555_s10 + $0x80] sm:$0xff]  ;;  %v1295_v1 = vld [vmem:[%s1570_s20 + $0x8] sm:$0xff]  ;;  %v570_v7 = vld [vmem:[%s1557_s12 + $0x78] sm:$0xff]  ;;  %s802_s10 = sshll.u32 %s876_s19, 4  ;;  %s803_s10 = int_to_ptr.vmem [resolvable:$true] %s802_s10 }
  0x30   :  { %281 = vmatpush.msrb.mxu1 %v249_v11  ;;  %259 = vmatpush.msrb.mxu0 %v232_v12  ;;  %v302_v46 = vld [vmem:[%s1554_s9] sm:$0x1]  ;;  %vm343_vm4 = vcmp.gt.f32.partialorder %v1295_v1, 0.5  ;;  %v569_v8 = vld [vmem:[%s1557_s12 + $0x70] sm:$0xff]  ;;  %v568_v9 = vld [vmem:[%s1557_s12 + $0x68] sm:$0xff] }
  0x31   :  { %822 = vset.pattern.permute.xlu2 %v874_v47  ;;  %821 = vset.pattern.permute.xlu0 %v875_v48  ;;  %v1286_v58 = vld [vmem:[%s1570_s20] sm:$0xff]  ;;  %v586_v1 = vld [vmem:[%s1557_s12 + $0xf8] sm:$0xff]  ;;  %s804_s20 = sshll.u32 %s1563_s18, 4  ;;  %s805_s20 = int_to_ptr.hbm [resolvable:$true] %s804_s20 }
  0x32   :  { %282 = vmatpush.msrb.mxu1 %v248_v13  ;;  %260 = vmatpush.msrb.mxu0 %v231_v14  ;;  %vm342_vm1 = vcmp.gt.f32.partialorder %v1286_v58, 0.5  ;;  %v567_v11 = vld [vmem:[%s1557_s12 + $0x60] sm:$0xff]  ;;  %v585_v58 = vld [vmem:[%s1557_s12 + $0xf0] sm:$0xff] }
  0x33   :  { %823 = vset.pattern.permute.xlu1 %v875_v48  ;;  %587 = vmatpush.msrb.mxu3 %v570_v7  ;;  %v584_v7 = vld [vmem:[%s1557_s12 + $0xe8] sm:$0xff] }
  0x34   :  { %283 = vmatpush.msrb.mxu1 %v247_v15  ;;  %261 = vmatpush.msrb.mxu0 %v230_v16 }
  0x35   :  { %588 = vmatpush.msrb.mxu3 %v569_v8 }
  0x36   :  { %284 = vmatpush.msrb.mxu1 %v246_v17  ;;  %262 = vmatpush.msrb.mxu0 %v229_v18 }
  0x37   :  { %589 = vmatpush.msrb.mxu3 %v568_v9 }
  0x38   :  { %285 = vmatpush.msrb.mxu1 %v245_v19  ;;  %263 = vmatpush.msrb.mxu0 %v228_v21  ;;  %v566_v21 = vld [vmem:[%s1557_s12 + $0x58] sm:$0xff] }
  0x39   :  { %590 = vmatpush.msrb.mxu3 %v567_v11 }
  0x3a   :  { %286 = vmatpush.msrb.mxu1 %v244_v22  ;;  %264 = vmatpush.msrb.mxu0 %v227_v23  ;;  %v565_v22 = vld [vmem:[%s1557_s12 + $0x50] sm:$0xff]  ;;  %v564_v23 = vld [vmem:[%s1557_s12 + $0x48] sm:$0xff] }
  0x3b   :  { %591 = vmatpush.msrb.mxu3 %v566_v21 }
  0x3c   :  { %287 = vmatpush.msrb.mxu1 %v243_v24  ;;  %265 = vmatpush.msrb.mxu0 %v226_v28  ;;  %v563_v24 = vld [vmem:[%s1557_s12 + $0x40] sm:$0xff] }
  0x3d   :  { %592 = vmatpush.msrb.mxu3 %v565_v22 }
  0x3e   :  { %288 = vmatpush.msrb.mxu1 %v242_v29  ;;  %266 = vmatpush.msrb.mxu0 %v225_v32  ;;  %v559_v29 = vld [vmem:[%s1557_s12 + $0x20] sm:$0xff]  ;;  %v556_v32 = vld [vmem:[%s1557_s12 + $0x8] sm:$0xff] }
  0x3f   :  { %593 = vmatpush.msrb.mxu3 %v564_v23 }
  0x40   :  { %289 = vmatpush.msrb.mxu1 %v241_v33  ;;  %267 = vmatpush.msrb.mxu0 %v224_v35  ;;  %v555_v33 = vld [vmem:[%s1557_s12] sm:$0xff] }
  0x41   :  { %594 = vmatpush.msrb.mxu3 %v563_v24 }
  0x42   :  { %290 = vmatpush.msrb.mxu1 %v240_v36  ;;  %268 = vmatpush.msrb.mxu0 %v223_v37 }
  0x44   :  { %291 = vmatpush.msrb.mxu1 %v239_v38  ;;  %269 = vmatpush.msrb.mxu0 %v222_v40 }
  0x46   :  { %292 = vmatpush.msrb.mxu1 %v238_v41  ;;  %610 = vmatpush.msra.mxu0 %v586_v1 }
  0x48   :  { %611 = vmatpush.msra.mxu0 %v585_v58 }
  0x4a   :  { %612 = vmatpush.msra.mxu0 %v584_v7 }
  0xa1   :  { %v98_v25 = vpop.f32.mrf.mxu0 }
  0xa2   :  { %v99_v26 = vadd.f32 %v824_v20, %v98_v25  ;;  %v424_v20 = vld [vmem:[%s1554_s9 + $0x1] sm:$0x1]  ;;  %v562_v25 = vld [vmem:[%s1557_s12 + $0x38] sm:$0xff] }
  0xa3   :  { %v140_v30 = vpop.f32.mrf.mxu1  ;;  %595 = vmatpush.msrb.mxu3 %v562_v25 }
  0xa4   :  { %v101_v31 = vmax.f32 %v99_v26, 0.0  ;;  %v141_v34 = vadd.f32 %v825_v27, %v140_v30  ;;  %v561_v26 = vld [vmem:[%s1557_s12 + $0x30] sm:$0xff]  ;;  %v560_v27 = vld [vmem:[%s1557_s12 + $0x28] sm:$0xff]  ;;  %v558_v30 = vld [vmem:[%s1557_s12 + $0x18] sm:$0xff] }
  0xa5   :  { %596 = vmatpush.msrb.mxu3 %v561_v26 }
  0xa6   :  { %192 = vmatmul.f32.vlgmr.msra.gmra.mxu2 %v101_v31  ;;  %215 = vmatmul.f32.vlgmr.msra.gmra.mxu3 %v101_v31  ;;  %v143_v39 = vmax.f32 %v141_v34, 0.0  ;;  %v557_v31 = vld [vmem:[%s1557_s12 + $0x10] sm:$0xff] }
  0xa7   :  { %597 = vmatpush.msrb.mxu3 %v560_v27 }
  0xa9   :  { %598 = vmatpush.msrb.mxu3 %v559_v29 }
  0xab   :  { %599 = vmatpush.msrb.mxu3 %v558_v30  ;;  %v582_v30 = vld [vmem:[%s1557_s12 + $0xd8] sm:$0xff] }
  0xad   :  { %600 = vmatpush.msrb.mxu3 %v557_v31  ;;  %v581_v31 = vld [vmem:[%s1557_s12 + $0xd0] sm:$0xff] }
  0xae   :  { %195 = vmatmul.f32.gmra.mxu2 %v143_v39  ;;  %218 = vmatmul.f32.gmra.mxu3 %v143_v39 }
  0xaf   :  { %601 = vmatpush.msrb.mxu3 %v556_v32  ;;  %v580_v32 = vld [vmem:[%s1557_s12 + $0xc8] sm:$0xff] }
  0xb1   :  { %602 = vmatpush.msrb.mxu3 %v555_v33  ;;  %v579_v33 = vld [vmem:[%s1557_s12 + $0xc0] sm:$0xff] }
 0x129   :  { %v193_v42 = vpop.f32.mrf.mxu2  ;;  %v1272_v43 = vpop.f32.mrf.mxu3 }
 0x12a   :  { %270 = vmatmul.f32.vlgmr.msrb.gmra.mxu0 %v193_v42  ;;  %293 = vmatmul.f32.vlgmr.msrb.gmra.mxu1 %v1272_v43 }
 0x131   :  { %v196_v44 = vpop.f32.mrf.mxu2  ;;  %v1275_v45 = vpop.f32.mrf.mxu3 }
 0x132   :  { %273 = vmatmul.f32.gmra.mxu0 %v196_v44  ;;  %296 = vmatmul.f32.gmra.mxu1 %v1275_v45 }
 0x133   :  { %317 = vmatpush.xpose.msrb.mxu2 %v196_v44 }
 0x137   :  { %318 = vmatpush.xpose.msrb.mxu2 %v193_v42 }
 0x13a   :  { %319 = vmatmul.f32.vlgmr.msrb.gmra.mxu2 %v302_v46 }
 0x13b   :  { %379 = vmatpush.msra.mxu2 %v196_v44 }
 0x13d   :  { %380 = vmatpush.msra.mxu2 %v193_v42  ;;  %v1363_v42 = vld [vmem:[%s1556_s11] sm:$0x3] }
 0x13e   :  { %v543_v47 = vperm.slane %v1363_v42, 0 }
 0x13f   :  { %439 = vmatpush.xpose.msrb.mxu2 %v1275_v45 }
 0x143   :  { %440 = vmatpush.xpose.msrb.mxu2 %v1272_v43 }
 0x1a7   :  { %v271_v49 = vpop.f32.mrf.mxu0  ;;  %v294_v50 = vpop.f32.mrf.mxu1 }
 0x1a8   :  { %v295_v51 = vadd.f32 %v294_v50, %v271_v49 }
 0x1aa   :  { %446 = vperm.xlu2 %822, %v295_v51   ;;  %325 = vperm.xlu0 %821, %v295_v51  }
 0x1af   :  { %v274_v52 = vpop.f32.mrf.mxu0  ;;  %v297_v53 = vpop.f32.mrf.mxu1 }
 0x1b0   :  { %v298_v54 = vadd.f32 %v297_v53, %v274_v52 }
 0x1b2   :  { %450 = vperm.xlu2 %822, %v298_v54   ;;  %330 = vperm.xlu0 %821, %v298_v54  }
 0x1bd   :  { %v320_v55 = vpop.f32.mrf.mxu2 }
 0x1be   :  { %v333_v56 = vperm.slane %v320_v55, 0 }
 0x204   :  { %v447_v28 = vpop.permute.xlu2 %446 }
 0x20c   :  { %v451_v34 = vpop.permute.xlu2 %450 }
 0x21c   :  { %v326_v57 = vpop.permute.xlu0 %325 }
 0x21d   :  { %v334_v59 = vadd.f32 %v333_v56, %v326_v57 }
 0x21f   :  { %v338_v60 = vmul.f32 0.2, %v334_v59  ;;  %vm336_vm0 = vcmp.gt.f32.partialorder %v334_v59, 0.0 }
 0x221   :  { %v340_v61 = vsel %vm336_vm0, %v334_v59, %v338_v60 }
 0x222   :  { %v344_v62 = vsel %vm342_vm1, %v340_v61, -1e+30 }
 0x223   :  { %v347_v63 = vsel %vm346_vm2, %v344_v62, -inf }
 0x224   :  { %348 = vmax.xlane.f32.xlu1 %v347_v63  ;;  %v331_v0 = vpop.permute.xlu0 %330 }
 0x225   :  { %v335_v2 = vadd.f32 %v333_v56, %v331_v0 }
 0x227   :  { %v339_v3 = vmul.f32 0.2, %v335_v2  ;;  %vm337_vm3 = vcmp.gt.f32.partialorder %v335_v2, 0.0 }
 0x229   :  { %v341_v4 = vsel %vm337_vm3, %v335_v2, %v339_v3 }
 0x22a   :  { %v345_v5 = vsel %vm343_vm4, %v341_v4, -1e+30 }
 0x22b   :  { %v350_v6 = vsel %vm346_vm2, %v345_v5, -inf }
 0x22c   :  { %351 = vmax.xlane.f32.xlu1 %v350_v6 }
 0x297   :  { %v349_v10 = vpop.xlane.xlu1 %348 }
 0x298   :  { %v353_v12 = vsub.f32 %v344_v62, %v349_v10  ;;  %v583_v10 = vld [vmem:[%s1557_s12 + $0xe0] sm:$0xff] }
 0x299   :  { %613 = vmatpush.msra.mxu0 %v583_v10 }
 0x29a   :  { %v355_v13 = vmul.f32 1.442695, %v353_v12 }
 0x29b   :  { %614 = vmatpush.msra.mxu0 %v582_v30 }
 0x29c   :  { %828 = vpow2.f32 %v355_v13 }
 0x29d   :  { %615 = vmatpush.msra.mxu0 %v581_v31  ;;  %v669_v31 = vld [vmem:[%s1558_s13] sm:$0x1] }
 0x29f   :  { %v352_v14 = vpop.xlane.xlu1 %351  ;;  %616 = vmatpush.msra.mxu0 %v580_v32 }
 0x2a0   :  { %v354_v15 = vsub.f32 %v345_v5, %v352_v14 }
 0x2a1   :  { %617 = vmatpush.msra.mxu0 %v579_v33 }
 0x2a2   :  { %v829_v16 = vpop.eup %828  ;;  %v357_v17 = vmul.f32 1.442695, %v354_v15 }
 0x2a3   :  { %813 = vmatmul.msk.f32.vlgmr.msra.gmra.mxu2 %vm346_vm2, %v829_v16  ;;  %v388_v18 = vsel %vm346_vm2, %v829_v16, 0.0 }
 0x2a4   :  { %830 = vpow2.f32 %v357_v17  ;;  %496 = vmatpush.msra.mxu2 %v1275_v45  ;;  %389 = vadd.xlane.f32.xlu2 %v388_v18 }
 0x2a6   :  { %497 = vmatpush.msra.mxu2 %v1272_v43 }
 0x2aa   :  { %v1317_v19 = vpop.eup %830 }
 0x2ab   :  { %814 = vmatmul.msk.f32.gmra.mxu2 %vm346_vm2, %v1317_v19  ;;  %v391_v3 = vsel %vm346_vm2, %v1317_v19, 0.0 }
 0x2b3   :  { %441 = vmatmul.f32.vlgmr.msrb.gmra.mxu2 %v424_v20 }
 0x317   :  { %v390_v35 = vpop.xlane.xlu2 %389 }
 0x318   :  { %832 = vrcp.f32 %v390_v35  ;;  %v405_v39 = vand.u32 2147483648, %v390_v35  ;;  %v403_v41 = vand.u32 2147483647, %v390_v35  ;;  %vm399_vm6 = vweird.f32 %v390_v35 }
 0x31a   :  { %v406_v45 = vor.u32 1.1754944e-38, %v405_v39  ;;  %vm404_vm8 = vcmp.eq.f32.partialorder %v403_v41, 8.507059e+37  ;;  %v573_v39 = vld [vmem:[%s1557_s12 + $0x90] sm:$0xff]  ;;  %v571_v41 = vld [vmem:[%s1557_s12 + $0x80] sm:$0xff] }
 0x31e   :  { %v833_v36 = vpop.eup %832 }
 0x31f   :  { %v395_v37 = vmul.f32 %v833_v36, %v390_v35  ;;  %vm400_vm5 = vweird.f32 %v833_v36  ;;  %v577_v35 = vld [vmem:[%s1557_s12 + $0xb0] sm:$0xff] }
 0x320   :  { %vm401_vm7 = vmor %vm399_vm6, %vm400_vm5 }
 0x321   :  { %v396_v38 = vsub.f32 1.0, %v395_v37  ;;  %v575_v37 = vld [vmem:[%s1557_s12 + $0xa0] sm:$0xff] }
 0x323   :  { %v397_v40 = vmul.f32 %v833_v36, %v396_v38  ;;  %v574_v38 = vld [vmem:[%s1557_s12 + $0x98] sm:$0xff] }
 0x325   :  { %v398_v43 = vadd.f32 %v833_v36, %v397_v40  ;;  %v572_v40 = vld [vmem:[%s1557_s12 + $0x88] sm:$0xff] }
 0x326   :  { %v382_v44 = vpop.f32.mrf.mxu2 }
 0x327   :  { %v402_v46 = vsel %vm401_vm7, %v833_v36, %v398_v43  ;;  %v576_v36 = vld [vmem:[%s1557_s12 + $0xa8] sm:$0xff] }
 0x328   :  { %v407_v48 = vsel %vm404_vm8, %v406_v45, %v402_v46  ;;  %v647_v45 = vld [vmem:[%s1559_s14 + $0x70] sm:$0xff]  ;;  %v646_v46 = vld [vmem:[%s1559_s14 + $0x68] sm:$0xff] }
 0x329   :  { %v422_v49 = vmul.f32 %v407_v48, %v382_v44  ;;  %v648_v44 = vld [vmem:[%s1559_s14 + $0x78] sm:$0xff] }
 0x32a   :  { %649 = vmatpush.msra.mxu1 %v648_v44  ;;  %v770_v44 = vld [vmem:[%s1561_s16 + $0x70] sm:$0xff] }
 0x32b   :  { %v547_v50 = vadd.f32 %v543_v47, %v422_v49 }
 0x32c   :  { %650 = vmatpush.msra.mxu1 %v647_v45  ;;  %v769_v45 = vld [vmem:[%s1561_s16 + $0x68] sm:$0xff] }
 0x32d   :  { %v551_v51 = vmax.f32 %v547_v50, 0.0 }
 0x32e   :  { %v385_v52 = vpop.f32.mrf.mxu2  ;;  %651 = vmatpush.msra.mxu1 %v646_v46  ;;  %v768_v46 = vld [vmem:[%s1561_s16 + $0x60] sm:$0xff] }
 0x32f   :  { %603 = vmatmul.f32.vlgmr.msrb.gmra.mxu3 %v551_v51  ;;  %v644_v51 = vld [vmem:[%s1559_s14 + $0x58] sm:$0xff] }
 0x336   :  { %v442_v53 = vpop.f32.mrf.mxu2 }
 0x337   :  { %v453_v54 = vperm.slane %v442_v53, 0  ;;  %v643_v53 = vld [vmem:[%s1559_s14 + $0x50] sm:$0xff] }
 0x339   :  { %v454_v55 = vadd.f32 %v453_v54, %v447_v28  ;;  %v455_v56 = vadd.f32 %v453_v54, %v451_v34  ;;  %v578_v34 = vld [vmem:[%s1557_s12 + $0xb8] sm:$0xff] }
 0x33a   :  { %618 = vmatpush.msra.mxu0 %v578_v34 }
 0x33b   :  { %vm457_vm9 = vcmp.gt.f32.partialorder %v455_v56, 0.0  ;;  %v459_v57 = vmul.f32 0.2, %v455_v56  ;;  %vm456_vm10 = vcmp.gt.f32.partialorder %v454_v55, 0.0  ;;  %v458_v59 = vmul.f32 0.2, %v454_v55 }
 0x33c   :  { %619 = vmatpush.msra.mxu0 %v577_v35 }
 0x33d   :  { %v461_v60 = vsel %vm457_vm9, %v455_v56, %v459_v57  ;;  %v460_v61 = vsel %vm456_vm10, %v454_v55, %v458_v59  ;;  %v642_v57 = vld [vmem:[%s1559_s14 + $0x48] sm:$0xff] }
 0x33e   :  { %v463_v62 = vsel %vm343_vm4, %v461_v60, -1e+30  ;;  %v462_v63 = vsel %vm342_vm1, %v460_v61, -1e+30  ;;  %620 = vmatpush.msra.mxu0 %v576_v36  ;;  %v641_v60 = vld [vmem:[%s1559_s14 + $0x40] sm:$0xff] }
 0x33f   :  { %v467_v0 = vsel %vm346_vm2, %v463_v62, -inf  ;;  %v464_v2 = vsel %vm346_vm2, %v462_v63, -inf  ;;  %v700_v36 = vld [vmem:[%s1548_s3] sm:$0xff] }
 0x340   :  { %468 = vmax.xlane.f32.xlu1 %v467_v0  ;;  %465 = vmax.xlane.f32.xlu0 %v464_v2  ;;  %vm701_vm9 = vcmp.gt.f32.partialorder %v700_v36, 0.5 }
 0x341   :  { %621 = vmatpush.msra.mxu0 %v575_v37 }
 0x343   :  { %622 = vmatpush.msra.mxu0 %v574_v38 }
 0x345   :  { %623 = vmatpush.msra.mxu0 %v573_v39 }
 0x347   :  { %624 = vmatpush.msra.mxu0 %v572_v40 }
 0x348   :  { %392 = vadd.xlane.f32.xlu1 %v391_v3  ;;  %v544_v3 = vperm.slane %v1363_v42, 1 }
 0x349   :  { %625 = vmatpush.msra.mxu0 %v571_v41 }
 0x3b3   :  { %v469_v4 = vpop.xlane.xlu1 %468  ;;  %v466_v5 = vpop.xlane.xlu0 %465 }
 0x3b4   :  { %v470_v6 = vsub.f32 %v462_v63, %v466_v5  ;;  %v471_v9 = vsub.f32 %v463_v62, %v469_v4  ;;  %v640_v4 = vld [vmem:[%s1559_s14 + $0x38] sm:$0xff] }
 0x3b6   :  { %v472_v8 = vmul.f32 1.442695, %v470_v6  ;;  %v474_v11 = vmul.f32 1.442695, %v471_v9  ;;  %v639_v6 = vld [vmem:[%s1559_s14 + $0x30] sm:$0xff] }
 0x3b8   :  { %834 = vpow2.f32 %v472_v8 }
 0x3bb   :  { %v393_v12 = vpop.xlane.xlu1 %392 }
 0x3bc   :  { %836 = vrcp.f32 %v393_v12  ;;  %v419_v19 = vand.u32 2147483648, %v393_v12  ;;  %v417_v21 = vand.u32 2147483647, %v393_v12  ;;  %vm413_vm12 = vweird.f32 %v393_v12 }
 0x3bd   :  { %838 = vpow2.f32 %v474_v11 }
 0x3be   :  { %v835_v13 = vpop.eup %834  ;;  %v420_v24 = vor.u32 1.1754944e-38, %v419_v19  ;;  %vm418_vm14 = vcmp.eq.f32.partialorder %v417_v21, 8.507059e+37  ;;  %v638_v19 = vld [vmem:[%s1559_s14 + $0x28] sm:$0xff]  ;;  %v636_v21 = vld [vmem:[%s1559_s14 + $0x18] sm:$0xff] }
 0x3bf   :  { %815 = vmatmul.msk.f32.vlgmr.msra.gmra.mxu2 %vm346_vm2, %v835_v13  ;;  %v505_v14 = vsel %vm346_vm2, %v835_v13, 0.0 }
 0x3c0   :  { %506 = vadd.xlane.f32.xlu1 %v505_v14 }
 0x3c2   :  { %v837_v15 = vpop.eup %836 }
 0x3c3   :  { %v409_v16 = vmul.f32 %v837_v15, %v393_v12  ;;  %v839_v17 = vpop.eup %838  ;;  %vm414_vm11 = vweird.f32 %v837_v15 }
 0x3c4   :  { %v508_v22 = vsel %vm346_vm2, %v839_v17, 0.0  ;;  %vm415_vm13 = vmor %vm413_vm12, %vm414_vm11 }
 0x3c5   :  { %v410_v18 = vsub.f32 1.0, %v409_v16 }
 0x3c7   :  { %v411_v20 = vmul.f32 %v837_v15, %v410_v18  ;;  %816 = vmatmul.msk.f32.gmra.mxu2 %vm346_vm2, %v839_v17 }
 0x3c8   :  { %509 = vadd.xlane.f32.xlu1 %v508_v22  ;;  %v635_v22 = vld [vmem:[%s1559_s14 + $0x10] sm:$0xff] }
 0x3c9   :  { %v412_v23 = vadd.f32 %v837_v15, %v411_v20  ;;  %v637_v20 = vld [vmem:[%s1559_s14 + $0x20] sm:$0xff] }
 0x3cb   :  { %v416_v25 = vsel %vm415_vm13, %v837_v15, %v412_v23  ;;  %v634_v23 = vld [vmem:[%s1559_s14 + $0x8] sm:$0xff] }
 0x3cc   :  { %v421_v26 = vsel %vm418_vm14, %v420_v24, %v416_v25  ;;  %v633_v24 = vld [vmem:[%s1559_s14] sm:$0xff]  ;;  %v604_v25 = vpop.f32.mrf.mxu3 }
 0x3cd   :  { %v423_v27 = vmul.f32 %v421_v26, %v385_v52 }
 0x3cf   :  { %v549_v28 = vadd.f32 %v543_v47, %v423_v27  ;;  %v645_v47 = vld [vmem:[%s1559_s14 + $0x60] sm:$0xff] }
 0x3d0   :  { %652 = vmatpush.msra.mxu1 %v645_v47 }
 0x3d1   :  { %v553_v29 = vmax.f32 %v549_v28, 0.0 }
 0x3d2   :  { %653 = vmatpush.msra.mxu1 %v644_v51 }
 0x3d3   :  { %606 = vmatmul.f32.gmra.mxu3 %v553_v29 }
 0x3d4   :  { %654 = vmatpush.msra.mxu1 %v643_v53  ;;  %v766_v53 = vld [vmem:[%s1561_s16 + $0x50] sm:$0xff] }
 0x3d6   :  { %655 = vmatpush.msra.mxu1 %v642_v57  ;;  %v762_v57 = vld [vmem:[%s1561_s16 + $0x30] sm:$0xff] }
 0x3d8   :  { %656 = vmatpush.msra.mxu1 %v641_v60  ;;  %v760_v60 = vld [vmem:[%s1561_s16 + $0x20] sm:$0xff] }
 0x3da   :  { %657 = vmatpush.msra.mxu1 %v640_v4 }
 0x3dc   :  { %658 = vmatpush.msra.mxu1 %v639_v6 }
 0x3de   :  { %659 = vmatpush.msra.mxu1 %v638_v19 }
 0x3e0   :  { %660 = vmatpush.msra.mxu1 %v637_v20 }
 0x3e2   :  { %661 = vmatpush.msra.mxu1 %v636_v21 }
 0x3e4   :  { %662 = vmatpush.msra.mxu1 %v635_v22 }
 0x3e6   :  { %663 = vmatpush.msra.mxu1 %v634_v23 }
 0x3e8   :  { %664 = vmatpush.msra.mxu1 %v633_v24 }
 0x433   :  { %v507_v43 = vpop.xlane.xlu1 %506 }
 0x434   :  { %840 = vrcp.f32 %v507_v43  ;;  %v522_v54 = vand.u32 2147483648, %v507_v43  ;;  %v520_v56 = vand.u32 2147483647, %v507_v43  ;;  %vm516_vm0 = vweird.f32 %v507_v43 }
 0x436   :  { %v523_v63 = vor.u32 1.1754944e-38, %v522_v54  ;;  %vm521_vm3 = vcmp.eq.f32.partialorder %v520_v56, 8.507059e+37  ;;  %v765_v54 = vld [vmem:[%s1561_s16 + $0x48] sm:$0xff]  ;;  %v763_v56 = vld [vmem:[%s1561_s16 + $0x38] sm:$0xff] }
 0x43a   :  { %v841_v48 = vpop.eup %840 }
 0x43b   :  { %v512_v49 = vmul.f32 %v841_v48, %v507_v43  ;;  %v510_v50 = vpop.xlane.xlu1 %509  ;;  %vm517_vm15 = vweird.f32 %v841_v48  ;;  %v771_v43 = vld [vmem:[%s1561_s16 + $0x78] sm:$0xff] }
 0x43c   :  { %842 = vrcp.f32 %v510_v50  ;;  %vm518_vm1 = vmor %vm516_vm0, %vm517_vm15  ;;  %v536_v7 = vand.u32 2147483648, %v510_v50  ;;  %v534_v10 = vand.u32 2147483647, %v510_v50  ;;  %vm530_vm5 = vweird.f32 %v510_v50  ;;  %776 = vmatpush.msra.mxu3 %v771_v43 }
 0x43d   :  { %v513_v52 = vsub.f32 1.0, %v512_v49 }
 0x43e   :  { %v537_v12 = vor.u32 1.1754944e-38, %v536_v7  ;;  %vm535_vm7 = vcmp.eq.f32.partialorder %v534_v10, 8.507059e+37  ;;  %777 = vmatpush.msra.mxu3 %v770_v44  ;;  %v826_v10 = vld [vmem:[%s1560_s15] ss:$0 sm:$0xff] }
 0x43f   :  { %v514_v55 = vmul.f32 %v841_v48, %v513_v52  ;;  %v767_v52 = vld [vmem:[%s1561_s16 + $0x58] sm:$0xff] }
 0x440   :  { %778 = vmatpush.msra.mxu3 %v769_v45 }
 0x441   :  { %v515_v59 = vadd.f32 %v841_v48, %v514_v55  ;;  %v764_v55 = vld [vmem:[%s1561_s16 + $0x40] sm:$0xff] }
 0x442   :  { %v843_v61 = vpop.eup %842  ;;  %v499_v62 = vpop.f32.mrf.mxu2  ;;  %779 = vmatpush.msra.mxu3 %v768_v46 }
 0x443   :  { %v526_v0 = vmul.f32 %v843_v61, %v510_v50  ;;  %v519_v2 = vsel %vm518_vm1, %v841_v48, %v515_v59  ;;  %vm531_vm4 = vweird.f32 %v843_v61  ;;  %v761_v59 = vld [vmem:[%s1561_s16 + $0x28] sm:$0xff] }
 0x444   :  { %v524_v5 = vsel %vm521_vm3, %v523_v63, %v519_v2  ;;  %vm532_vm6 = vmor %vm530_vm5, %vm531_vm4  ;;  %780 = vmatpush.msra.mxu3 %v767_v52  ;;  %v757_v63 = vld [vmem:[%s1561_s16 + $0x8] sm:$0xff] }
 0x445   :  { %v527_v1 = vsub.f32 1.0, %v526_v0  ;;  %v539_v58 = vmul.f32 %v524_v5, %v499_v62  ;;  %v758_v62 = vld [vmem:[%s1561_s16 + $0x10] sm:$0xff]  ;;  %v756_v0 = vld [vmem:[%s1561_s16] sm:$0xff] }
 0x446   :  { %781 = vmatpush.msra.mxu3 %v766_v53 }
 0x447   :  { %v548_v8 = vadd.f32 %v544_v3, %v539_v58  ;;  %v528_v9 = vmul.f32 %v843_v61, %v527_v1 }
 0x448   :  { %782 = vmatpush.msra.mxu3 %v765_v54 }
 0x449   :  { %v552_v42 = vmax.f32 %v548_v8, 0.0  ;;  %v529_v11 = vadd.f32 %v843_v61, %v528_v9 }
 0x44a   :  { %v502_v14 = vpop.f32.mrf.mxu2  ;;  %783 = vmatpush.msra.mxu3 %v764_v55 }
 0x44b   :  { %v533_v13 = vsel %vm532_vm6, %v843_v61, %v529_v11  ;;  %626 = vmatmul.f32.vlgmr.msra.gmra.mxu0 %v552_v42  ;;  %v759_v61 = vld [vmem:[%s1561_s16 + $0x18] sm:$0xff] }
 0x44c   :  { %v538_v15 = vsel %vm535_vm7, %v537_v12, %v533_v13  ;;  %784 = vmatpush.msra.mxu3 %v763_v56 }
 0x44d   :  { %v540_v16 = vmul.f32 %v538_v15, %v502_v14  ;;  %v827_v15 = vld [vmem:[%s1562_s17] ss:$0 sm:$0xff] }
 0x44e   :  { %785 = vmatpush.msra.mxu3 %v762_v57 }
 0x44f   :  { %v550_v17 = vadd.f32 %v544_v3, %v540_v16 }
 0x450   :  { %786 = vmatpush.msra.mxu3 %v761_v59 }
 0x451   :  { %v554_v18 = vmax.f32 %v550_v17, 0.0 }
 0x452   :  { %787 = vmatpush.msra.mxu3 %v760_v60 }
 0x453   :  { %629 = vmatmul.f32.gmra.mxu0 %v554_v18 }
 0x454   :  { %788 = vmatpush.msra.mxu3 %v759_v61 }
 0x456   :  { %v607_v27 = vpop.f32.mrf.mxu3  ;;  %789 = vmatpush.msra.mxu3 %v758_v62 }
 0x458   :  { %790 = vmatpush.msra.mxu3 %v757_v63 }
 0x45a   :  { %791 = vmatpush.msra.mxu3 %v756_v0 }
 0x4c8   :  { %v627_v26 = vpop.f32.mrf.mxu0 }
 0x4c9   :  { %v628_v30 = vadd.f32 %v627_v26, %v604_v25 }
 0x4d0   :  { %v630_v28 = vpop.f32.mrf.mxu0 }
 0x4d1   :  { %v631_v29 = vadd.f32 %v630_v28, %v607_v27 }
 0x4d3   :  { %665 = vmatmul.f32.vlgmr.msra.gmra.mxu1 %v631_v29  ;;  %684 = vmatpush.xpose.msrb.mxu2 %v631_v29 }
 0x4d7   :  { %685 = vmatpush.xpose.msrb.mxu2 %v628_v30 }
 0x4da   :  { %686 = vmatmul.f32.vlgmr.msrb.gmra.mxu2 %v669_v31 }
 0x4db   :  { %726 = vmatpush.msra.mxu2 %v631_v29 }
 0x4dd   :  { %727 = vmatpush.msra.mxu2 %v628_v30 }
 0x550   :  { %v666_v32 = vpop.f32.mrf.mxu1 }
 0x551   :  { %692 = vperm.xlu1 %823, %v666_v32  }
 0x55d   :  { %v687_v33 = vpop.f32.mrf.mxu2 }
 0x55e   :  { %v695_v34 = vperm.slane %v687_v33, 0 }
 0x5c3   :  { %v693_v35 = vpop.permute.xlu1 %692 }
 0x5c4   :  { %v696_v37 = vadd.f32 %v695_v34, %v693_v35 }
 0x5c6   :  { %v698_v38 = vmul.f32 0.2, %v696_v37  ;;  %vm697_vm8 = vcmp.gt.f32.partialorder %v696_v37, 0.0 }
 0x5c8   :  { %v699_v39 = vsel %vm697_vm8, %v696_v37, %v698_v38 }
 0x5c9   :  { %v702_v40 = vsel %vm701_vm9, %v699_v39, -1e+30 }
 0x5ca   :  { %v703_v41 = vsel %vm346_vm2, %v702_v40, -inf }
 0x5cb   :  { %704 = vmax.xlane.f32.xlu2 %v703_v41 }
 0x63e   :  { %v705_v47 = vpop.xlane.xlu2 %704 }
 0x63f   :  { %v706_v48 = vsub.f32 %v702_v40, %v705_v47 }
 0x641   :  { %v707_v49 = vmul.f32 1.442695, %v706_v48 }
 0x643   :  { %844 = vpow2.f32 %v707_v49 }
 0x649   :  { %v845_v50 = vpop.eup %844 }
 0x64a   :  { %817 = vmatmul.msk.f32.vlgmr.msra.gmra.mxu2 %vm346_vm2, %v845_v50  ;;  %v732_v51 = vsel %vm346_vm2, %v845_v50, 0.0 }
 0x64b   :  { %733 = vadd.xlane.f32.xlu0 %v732_v51 }
 0x6be   :  { %v734_v2 = vpop.xlane.xlu0 %733 }
 0x6bf   :  { %846 = vrcp.f32 %v734_v2  ;;  %v746_v1 = vand.u32 2147483648, %v734_v2  ;;  %v744_v6 = vand.u32 2147483647, %v734_v2  ;;  %vm740_vm10 = vweird.f32 %v734_v2 }
 0x6c1   :  { %v747_v8 = vor.u32 1.1754944e-38, %v746_v1  ;;  %vm745_vm12 = vcmp.eq.f32.partialorder %v744_v6, 8.507059e+37 }
 0x6c5   :  { %v847_v3 = vpop.eup %846 }
 0x6c6   :  { %v736_v4 = vmul.f32 %v847_v3, %v734_v2  ;;  %vm741_vm2 = vweird.f32 %v847_v3 }
 0x6c7   :  { %vm742_vm11 = vmor %vm740_vm10, %vm741_vm2 }
 0x6c8   :  { %v737_v5 = vsub.f32 1.0, %v736_v4 }
 0x6ca   :  { %v738_v58 = vmul.f32 %v847_v3, %v737_v5 }
 0x6cc   :  { %v739_v7 = vadd.f32 %v847_v3, %v738_v58 }
 0x6cd   :  { %v729_v42 = vpop.f32.mrf.mxu2 }
 0x6ce   :  { %v743_v9 = vsel %vm742_vm11, %v847_v3, %v739_v7 }
 0x6cf   :  { %v748_v11 = vsel %vm745_vm12, %v747_v8, %v743_v9 }
 0x6d0   :  { %v749_v12 = vmul.f32 %v748_v11, %v729_v42 }
 0x6d2   :  { %v754_v13 = vadd.f32 %v826_v10, %v749_v12 }
 0x6d4   :  { %v755_v14 = vmax.f32 %v754_v13, 0.0 }
 0x6d6   :  { %792 = vmatmul.f32.vlgmr.msra.gmra.mxu3 %v755_v14 }
 0x759   :  { %v793_v16 = vpop.f32.mrf.mxu3 }
 0x75a   :  { %v794_v17 = vadd.f32 %v827_v15, %v793_v16 }
 0x75c   :  { %796 = vst [vmem:[#allocation2] sm:$0xff] %v794_v17 }
 0x75d   :  { %807 = dma.vmem_to_hbm [thread:$0]  %s803_s10, 128, %s805_s20, [#allocation3]  }
 0x75e   :  { %872 = dma.done.wait [#allocation3], 128  }
 0x75f   :  { %873 = vsyncadd [#allocation3], 4294967168 }
 0x760   :  { %812 = vsyncpa [#allocation3], 1 }

</bundles_post_ra>
